<compile_context>
chip_gen: v5e
topology: v5e:2x2
jax: 0.10.0
libtpu: 0.0.40
codegen_flags: <defaults>
</compile_context>

<pallas_src>
import functools

import jax
import jax.numpy as jnp
from jax import lax
from jax.experimental import pallas as pl
from jax.experimental.pallas import tpu as pltpu


# ----------------------------------------------------------------------------
# Pallas kernel: fused [3-NN inverse-distance interpolation] + [chain of
# 1x1 conv + bias + ReLU layers], tiled over query points.
# ----------------------------------------------------------------------------
def _deconv_mlp_kernel(n_layers, dxyz_ref, sxyzT_ref, ssq_ref, feat_ref, *rest):
    o_ref = rest[-1]
    wb = rest[:-1]                       # w0, b0, w1, b1, ...

    dxyz = dxyz_ref[0]                   # (TQ, 3)   dense query points (this tile)
    sxyzT = sxyzT_ref[0]                 # (3, Nsp)  sparse source points, transposed
    ssq = ssq_ref[0]                     # (1, Nsp)  ||sparse||^2 per point
    feat = feat_ref[0]                   # (Nsp, C0) features on sparse points
    tq = dxyz.shape[0]
    nsp = sxyzT.shape[1]

    # Pairwise squared distances via the MXU:  ||d||^2 + ||s||^2 - 2 d.s
    cross = jnp.dot(dxyz, sxyzT, preferred_element_type=jnp.float32)   # (TQ, Nsp)
    dsq = jnp.sum(dxyz * dxyz, axis=-1, keepdims=True)                 # (TQ, 1)
    d2 = jnp.maximum(dsq + ssq - 2.0 * cross, 0.0)

    # Packed (distance, column) int32 key: one lane-reduce per neighbor instead
    # of two.  The low `shift` mantissa bits of the non-negative f32 distance
    # are traded for the column index, so the distance used for the 1/d^2
    # weight is truncated by at most a relative 2^-(23-shift) (negligible).
    # TODO(synk): for Nsp approaching 2^20 the packed-key precision degrades;
    # fall back to a separate argmin reduction in that regime.
    shift = max(int(nsp - 1).bit_length(), 1)
    low_mask = (1 << shift) - 1
    col = lax.broadcasted_iota(jnp.int32, (tq, nsp), 1)
    key = (pltpu.bitcast(d2, jnp.int32) & jnp.int32(~low_mask)) | col
    masked_key = jnp.int32(0x7F7FFFFF)   # > any finite-distance key

    wmat = jnp.zeros((tq, nsp), jnp.float32)
    wsum = jnp.zeros((tq, 1), jnp.float32)
    for _ in range(3):                   # 3 nearest neighbors
        kmin = jnp.min(key, axis=-1, keepdims=True)                     # (TQ, 1)
        amin = kmin & jnp.int32(low_mask)                               # argmin column
        dmin = pltpu.bitcast(kmin & jnp.int32(~low_mask), jnp.float32)  # min distance
        onehot = col == amin                                            # (TQ, Nsp) bool
        w = 1.0 / (dmin + 1e-8)                                         # IDW weight
        wmat = wmat + jnp.where(onehot, w, 0.0)
        wsum = wsum + w
        key = jnp.where(onehot, masked_key, key)                        # drop chosen col
    wmat = wmat * (1.0 / wsum)                                          # normalize

    # Weighted gather as an MXU matmul, then the fused 1x1-conv chain; every
    # inter-layer activation stays in VMEM / vregs (no HBM round trips).
    y = jnp.dot(wmat, feat, preferred_element_type=jnp.float32)         # (TQ, C0)
    for li in range(n_layers):
        w_l = wb[2 * li][...]            # (Cin, Cout)
        b_l = wb[2 * li + 1][...]        # (1, Cout)
        y = jnp.maximum(jnp.dot(y, w_l, preferred_element_type=jnp.float32) + b_l, 0.0)
    o_ref[0] = y.astype(o_ref.dtype)


def point_deconv_mlp(feat, xyz_sparse, xyz_dense, layers, tq=256):
    """3-NN inverse-distance interpolation of `feat` (living on xyz_sparse) onto
    xyz_dense, followed by a fused chain of 1x1 conv + ReLU layers.

    feat: (B, Nsp, C0), xyz_sparse: (B, Nsp, 3), xyz_dense: (B, Nd, 3)
    layers: list of (w (Cin, Cout), b (Cout,))  ->  returns (B, Nd, Cout_last).
    """
    B, Nd, _ = xyz_dense.shape
    _, Nsp, C0 = feat.shape
    n_layers = len(layers)
    cout = layers[-1][0].shape[1]
    tq = Nd if Nd <= tq else tq          # full dim for small Nd, else a multiple of 8

    xyz_dense = xyz_dense.astype(jnp.float32)
    xyz_sparse = xyz_sparse.astype(jnp.float32)
    sxyzT = jnp.swapaxes(xyz_sparse, 1, 2)                          # (B, 3, Nsp)
    ssq = jnp.sum(xyz_sparse * xyz_sparse, axis=-1)[:, None, :]     # (B, 1, Nsp)

    args = [xyz_dense, sxyzT, ssq, feat.astype(jnp.float32)]
    in_specs = [
        pl.BlockSpec((1, tq, 3), lambda b, q: (b, q, 0)),
        pl.BlockSpec((1, 3, Nsp), lambda b, q: (b, 0, 0)),
        pl.BlockSpec((1, 1, Nsp), lambda b, q: (b, 0, 0)),
        pl.BlockSpec((1, Nsp, C0), lambda b, q: (b, 0, 0)),
    ]
    for w, bias in layers:
        cin, co = w.shape
        args.append(w.astype(jnp.float32))
        args.append(bias.reshape(1, co).astype(jnp.float32))
        in_specs.append(pl.BlockSpec((cin, co), lambda b, q: (0, 0)))
        in_specs.append(pl.BlockSpec((1, co), lambda b, q: (0, 0)))

    return pl.pallas_call(
        functools.partial(_deconv_mlp_kernel, n_layers),
        out_shape=jax.ShapeDtypeStruct((B, Nd, cout), jnp.float32),
        grid=(B, pl.cdiv(Nd, tq)),
        in_specs=in_specs,
        out_specs=pl.BlockSpec((1, tq, cout), lambda b, q: (b, q, 0)),
        compiler_params=pltpu.CompilerParams(
            dimension_semantics=("parallel", "parallel"),
            vmem_limit_bytes=48 * 1024 * 1024),
    )(*args)


# ----------------------------------------------------------------------------
# Plain-JAX glue: farthest point sampling + gather (sequential / data-dependent)
# ----------------------------------------------------------------------------
def fps(xyz, npoint):
    """Farthest point sampling starting at index 0. xyz: (B, N, 3) -> (B, npoint)."""
    B, N, _ = xyz.shape
    npoint = int(min(npoint, N))  # TODO(synk): reference CUDA fps behavior when npoint > N unknown; clamped.

    def per_batch(pts):
        def body(i, state):
            dist, idxs, last = state
            p = pts[last]                                        # (3,)
            d = jnp.sum((pts - p[None, :]) ** 2, axis=-1)        # (N,)
            dist = jnp.minimum(dist, d)
            nxt = jnp.argmax(dist).astype(jnp.int32)
            idxs = idxs.at[i].set(nxt)
            return dist, idxs, nxt

        dist0 = jnp.full((N,), 1e10, jnp.float32)
        idxs0 = jnp.zeros((npoint,), jnp.int32)
        _, idxs, _ = lax.fori_loop(1, npoint, body, (dist0, idxs0, jnp.int32(0)))
        return idxs

    return jax.vmap(per_batch)(xyz)


def gather_points(points, idx):
    """points: (B, N, 3), idx: (B, M) -> (B, M, 3)."""
    return jnp.take_along_axis(points, idx[..., None].astype(jnp.int32), axis=1)


def geometry_sample(geometry, N, Ns):
    ls = [geometry]
    fi_id = fps(geometry, int(N / 2))
    fi_xyz = gather_points(geometry, fi_id)
    ls.append(fi_xyz)
    fi_id = fps(fi_xyz, int(N / 4))
    fi_xyz = gather_points(geometry, fi_id)   # gathers from `geometry` (as in reference)
    ls.append(fi_xyz)
    fi_id = fps(fi_xyz, Ns)                   # TODO(synk): Ns > N/4 in the reference call; fps clamps
    fi_xyz = gather_points(geometry, fi_id)
    ls.append(fi_xyz)
    return ls


# ----------------------------------------------------------------------------
# HyperDecoder
# ----------------------------------------------------------------------------
def init_hyper_decoder_params():
    key = jax.random.PRNGKey(42)
    ks = jax.random.split(key, 5)

    def lin(k, cin, cout):
        kw, kb = jax.random.split(k)
        w = jax.random.normal(kw, (cin, cout), jnp.float32) * 0.1
        b = jax.random.normal(kb, (cout,), jnp.float32) * 0.01
        return w, b

    p = {}
    p["dec1_w"], p["dec1_b"] = lin(ks[0], 6, 12)    # PointDeconv(Nout=Ns/2, 6 -> 12)
    p["dec2_w"], p["dec2_b"] = lin(ks[1], 12, 12)   # PointDeconv(Nout=Ns,   12 -> 12)
    p["mlp_w"],  p["mlp_b"]  = lin(ks[2], 12, 24)   # MLP 12 -> 24
    p["mlp1_w"], p["mlp1_b"] = lin(ks[3], 24, 8)    # MLP 24 -> 8 (ave)
    p["mlp2_w"], p["mlp2_b"] = lin(ks[4], 24, 8)    # MLP 24 -> 8 (std)
    return p


def hyper_decoder_forward(params, x, geo, Ns):
    ls = geometry_sample(geo, Ns, Ns)

    # PointDec1: interpolate x (on ls[2]) onto ls[1], conv 6->12 + ReLU.
    x = point_deconv_mlp(x, ls[2], ls[1],
                         [(params["dec1_w"], params["dec1_b"])])          # (B, Ns/2, 12)

    # PointDec2 + mlp + mlp1|mlp2 fused into one VMEM-resident pass; mlp1/mlp2
    # weights concatenated so ave/std come out of one lane-merged 16-wide store.
    head_w = jnp.concatenate([params["mlp1_w"], params["mlp2_w"]], axis=1)  # (24, 16)
    head_b = jnp.concatenate([params["mlp1_b"], params["mlp2_b"]], axis=0)  # (16,)
    out = point_deconv_mlp(
        x, ls[1], ls[0],
        [(params["dec2_w"], params["dec2_b"]),
         (params["mlp_w"], params["mlp_b"]),
         (head_w, head_b)])                                                # (B, Ns, 16)
    ave = out[..., :8]
    std = out[..., 8:]
    return ave, std


if __name__ == "__main__":
    Ns = 32
    B = 2
    key = jax.random.PRNGKey(0)
    kg, kx = jax.random.split(key)
    geo = jax.random.normal(kg, (B, Ns, 3), jnp.float32)        # geometry (B, N, 3)
    x = jax.random.normal(kx, (B, Ns // 4, 6), jnp.float32)     # features on ls[2] points, NLC layout

    params = init_hyper_decoder_params()
    fwd = jax.jit(functools.partial(hyper_decoder_forward, Ns=Ns))
    ave, std = fwd(params, x, geo)
    jax.block_until_ready((ave, std))
    assert ave.shape == (B, Ns, 8) and std.shape == (B, Ns, 8)
    assert jnp.all(jnp.isfinite(ave)) and jnp.all(jnp.isfinite(std))
    print("KERNEL_OK")
</pallas_src>

<mosaic_0001>
module attributes {stable_mosaic.version = 11 : i64} {
  func.func @_deconv_mlp_kernel(%arg0: i32, %arg1: i32, %arg2: memref<1x16x3xf32, #tpu.memory_space<vmem>>, %arg3: memref<1x3x8xf32, #tpu.memory_space<vmem>>, %arg4: memref<1x1x8xf32, #tpu.memory_space<vmem>>, %arg5: memref<1x8x6xf32, #tpu.memory_space<vmem>>, %arg6: memref<6x12xf32, #tpu.memory_space<vmem>>, %arg7: memref<1x12xf32, #tpu.memory_space<vmem>>, %arg8: memref<1x16x12xf32, #tpu.memory_space<vmem>>) attributes {dimension_semantics = [#tpu.dimension_semantics<parallel>, #tpu.dimension_semantics<parallel>], iteration_bounds = array<i64: 2, 1>, scalar_prefetch = 0 : i64, scratch_operands = 0 : i64, tpu.core_type = #tpu.core_type<tc>, window_params = [{transform_indices = @transform_0, window_bounds = array<i64: 1, 16, 3>}, {transform_indices = @transform_1, window_bounds = array<i64: 1, 3, 8>}, {transform_indices = @transform_2, window_bounds = array<i64: 1, 1, 8>}, {transform_indices = @transform_3, window_bounds = array<i64: 1, 8, 6>}, {pipeline_mode = #tpu.pipeline_mode<synchronous>, transform_indices = @transform_4, window_bounds = array<i64: 6, 12>}, {pipeline_mode = #tpu.pipeline_mode<synchronous>, transform_indices = @transform_5, window_bounds = array<i64: 1, 12>}, {transform_indices = @transform_6, window_bounds = array<i64: 1, 16, 12>}]} {
    %c0 = arith.constant 0 : index
    %c0_0 = arith.constant 0 : index
    %c0_1 = arith.constant 0 : index
    %0 = vector.load %arg2[%c0, %c0_0, %c0_1] : memref<1x16x3xf32, #tpu.memory_space<vmem>>, vector<1x16x3xf32>
    %1 = vector.shape_cast %0 : vector<1x16x3xf32> to vector<16x3xf32>
    %c0_2 = arith.constant 0 : index
    %c0_3 = arith.constant 0 : index
    %c0_4 = arith.constant 0 : index
    %2 = vector.load %arg3[%c0_2, %c0_3, %c0_4] : memref<1x3x8xf32, #tpu.memory_space<vmem>>, vector<1x3x8xf32>
    %3 = vector.shape_cast %2 : vector<1x3x8xf32> to vector<3x8xf32>
    %c0_5 = arith.constant 0 : index
    %c0_6 = arith.constant 0 : index
    %c0_7 = arith.constant 0 : index
    %4 = vector.load %arg4[%c0_5, %c0_6, %c0_7] : memref<1x1x8xf32, #tpu.memory_space<vmem>>, vector<1x1x8xf32>
    %5 = vector.shape_cast %4 : vector<1x1x8xf32> to vector<1x8xf32>
    %c0_8 = arith.constant 0 : index
    %c0_9 = arith.constant 0 : index
    %c0_10 = arith.constant 0 : index
    %6 = vector.load %arg5[%c0_8, %c0_9, %c0_10] : memref<1x8x6xf32, #tpu.memory_space<vmem>>, vector<1x8x6xf32>
    %7 = vector.shape_cast %6 : vector<1x8x6xf32> to vector<8x6xf32>
    %cst = arith.constant dense<0.000000e+00> : vector<16x8xf32>
    %8 = tpu.matmul %1, %3, %cst {dimension_numbers = #tpu.dot_dimension_numbers<[1], [0], [0], [1], [0, 0, 1, 1], [], []>} : vector<16x3xf32>, vector<3x8xf32>, vector<16x8xf32> -> vector<16x8xf32>
    %9 = arith.mulf %1, %1 : vector<16x3xf32>
    %cst_11 = arith.constant dense<0.000000e+00> : vector<16xf32>
    %10 = vector.multi_reduction <add>, %9, %cst_11 [1] : vector<16x3xf32> to vector<16xf32>
    %11 = vector.shape_cast %10 : vector<16xf32> to vector<16x1xf32>
    %12 = vector.broadcast %11 : vector<16x1xf32> to vector<16x8xf32>
    %13 = vector.broadcast %5 : vector<1x8xf32> to vector<16x8xf32>
    %14 = arith.addf %12, %13 : vector<16x8xf32>
    %cst_12 = arith.constant 2.000000e+00 : f32
    %15 = vector.broadcast %cst_12 : f32 to vector<16x8xf32>
    %16 = arith.mulf %15, %8 : vector<16x8xf32>
    %17 = arith.subf %14, %16 : vector<16x8xf32>
    %cst_13 = arith.constant 0.000000e+00 : f32
    %18 = vector.broadcast %cst_13 : f32 to vector<16x8xf32>
    %19 = arith.maximumf %17, %18 : vector<16x8xf32>
    %20 = tpu.iota {dimensions = array<i32: 1>} : vector<16x8xi32>
    %21 = tpu.bitcast %19 : vector<16x8xf32> -> vector<16x8xi32>
    %c-8_i32 = arith.constant -8 : i32
    %22 = vector.broadcast %c-8_i32 : i32 to vector<16x8xi32>
    %23 = arith.andi %21, %22 : vector<16x8xi32>
    %24 = arith.ori %23, %20 : vector<16x8xi32>
    %cst_14 = arith.constant 0.000000e+00 : f32
    %25 = vector.broadcast %cst_14 : f32 to vector<16x8xf32>
    %cst_15 = arith.constant 0.000000e+00 : f32
    %26 = vector.broadcast %cst_15 : f32 to vector<16x1xf32>
    %cst_16 = arith.constant dense<2147483647> : vector<16xi32>
    %27 = vector.multi_reduction <minsi>, %24, %cst_16 [1] : vector<16x8xi32> to vector<16xi32>
    %28 = vector.shape_cast %27 : vector<16xi32> to vector<16x1xi32>
    %c7_i32 = arith.constant 7 : i32
    %29 = vector.broadcast %c7_i32 : i32 to vector<16x1xi32>
    %30 = arith.andi %28, %29 : vector<16x1xi32>
    %c-8_i32_17 = arith.constant -8 : i32
    %31 = vector.broadcast %c-8_i32_17 : i32 to vector<16x1xi32>
    %32 = arith.andi %28, %31 : vector<16x1xi32>
    %33 = tpu.bitcast %32 : vector<16x1xi32> -> vector<16x1xf32>
    %34 = vector.broadcast %30 : vector<16x1xi32> to vector<16x8xi32>
    %35 = arith.cmpi eq, %20, %34 : vector<16x8xi32>
    %cst_18 = arith.constant 9.99999993E-9 : f32
    %36 = vector.broadcast %cst_18 : f32 to vector<16x1xf32>
    %37 = arith.addf %33, %36 : vector<16x1xf32>
    %cst_19 = arith.constant 1.000000e+00 : f32
    %38 = vector.broadcast %cst_19 : f32 to vector<16x1xf32>
    %39 = arith.divf %38, %37 : vector<16x1xf32>
    %cst_20 = arith.constant 0.000000e+00 : f32
    %40 = vector.shape_cast %39 : vector<16x1xf32> to vector<16x1xf32>
    %41 = vector.broadcast %40 : vector<16x1xf32> to vector<16x8xf32>
    %42 = vector.broadcast %cst_20 : f32 to vector<16x8xf32>
    %43 = arith.select %35, %41, %42 : vector<16x8xi1>, vector<16x8xf32>
    %44 = arith.addf %25, %43 : vector<16x8xf32>
    %45 = arith.addf %26, %39 : vector<16x1xf32>
    %c2139095039_i32 = arith.constant 2139095039 : i32
    %46 = vector.broadcast %c2139095039_i32 : i32 to vector<16x8xi32>
    %47 = arith.select %35, %46, %24 : vector<16x8xi1>, vector<16x8xi32>
    %cst_21 = arith.constant dense<2147483647> : vector<16xi32>
    %48 = vector.multi_reduction <minsi>, %47, %cst_21 [1] : vector<16x8xi32> to vector<16xi32>
    %49 = vector.shape_cast %48 : vector<16xi32> to vector<16x1xi32>
    %c7_i32_22 = arith.constant 7 : i32
    %50 = vector.broadcast %c7_i32_22 : i32 to vector<16x1xi32>
    %51 = arith.andi %49, %50 : vector<16x1xi32>
    %c-8_i32_23 = arith.constant -8 : i32
    %52 = vector.broadcast %c-8_i32_23 : i32 to vector<16x1xi32>
    %53 = arith.andi %49, %52 : vector<16x1xi32>
    %54 = tpu.bitcast %53 : vector<16x1xi32> -> vector<16x1xf32>
    %55 = vector.broadcast %51 : vector<16x1xi32> to vector<16x8xi32>
    %56 = arith.cmpi eq, %20, %55 : vector<16x8xi32>
    %cst_24 = arith.constant 9.99999993E-9 : f32
    %57 = vector.broadcast %cst_24 : f32 to vector<16x1xf32>
    %58 = arith.addf %54, %57 : vector<16x1xf32>
    %cst_25 = arith.constant 1.000000e+00 : f32
    %59 = vector.broadcast %cst_25 : f32 to vector<16x1xf32>
    %60 = arith.divf %59, %58 : vector<16x1xf32>
    %cst_26 = arith.constant 0.000000e+00 : f32
    %61 = vector.shape_cast %60 : vector<16x1xf32> to vector<16x1xf32>
    %62 = vector.broadcast %61 : vector<16x1xf32> to vector<16x8xf32>
    %63 = vector.broadcast %cst_26 : f32 to vector<16x8xf32>
    %64 = arith.select %56, %62, %63 : vector<16x8xi1>, vector<16x8xf32>
    %65 = arith.addf %44, %64 : vector<16x8xf32>
    %66 = arith.addf %45, %60 : vector<16x1xf32>
    %c2139095039_i32_27 = arith.constant 2139095039 : i32
    %67 = vector.broadcast %c2139095039_i32_27 : i32 to vector<16x8xi32>
    %68 = arith.select %56, %67, %47 : vector<16x8xi1>, vector<16x8xi32>
    %cst_28 = arith.constant dense<2147483647> : vector<16xi32>
    %69 = vector.multi_reduction <minsi>, %68, %cst_28 [1] : vector<16x8xi32> to vector<16xi32>
    %70 = vector.shape_cast %69 : vector<16xi32> to vector<16x1xi32>
    %c7_i32_29 = arith.constant 7 : i32
    %71 = vector.broadcast %c7_i32_29 : i32 to vector<16x1xi32>
    %72 = arith.andi %70, %71 : vector<16x1xi32>
    %c-8_i32_30 = arith.constant -8 : i32
    %73 = vector.broadcast %c-8_i32_30 : i32 to vector<16x1xi32>
    %74 = arith.andi %70, %73 : vector<16x1xi32>
    %75 = tpu.bitcast %74 : vector<16x1xi32> -> vector<16x1xf32>
    %76 = vector.broadcast %72 : vector<16x1xi32> to vector<16x8xi32>
    %77 = arith.cmpi eq, %20, %76 : vector<16x8xi32>
    %cst_31 = arith.constant 9.99999993E-9 : f32
    %78 = vector.broadcast %cst_31 : f32 to vector<16x1xf32>
    %79 = arith.addf %75, %78 : vector<16x1xf32>
    %cst_32 = arith.constant 1.000000e+00 : f32
    %80 = vector.broadcast %cst_32 : f32 to vector<16x1xf32>
    %81 = arith.divf %80, %79 : vector<16x1xf32>
    %cst_33 = arith.constant 0.000000e+00 : f32
    %82 = vector.shape_cast %81 : vector<16x1xf32> to vector<16x1xf32>
    %83 = vector.broadcast %82 : vector<16x1xf32> to vector<16x8xf32>
    %84 = vector.broadcast %cst_33 : f32 to vector<16x8xf32>
    %85 = arith.select %77, %83, %84 : vector<16x8xi1>, vector<16x8xf32>
    %86 = arith.addf %65, %85 : vector<16x8xf32>
    %87 = arith.addf %66, %81 : vector<16x1xf32>
    %cst_34 = arith.constant 1.000000e+00 : f32
    %88 = vector.broadcast %cst_34 : f32 to vector<16x1xf32>
    %89 = arith.divf %88, %87 : vector<16x1xf32>
    %90 = vector.broadcast %89 : vector<16x1xf32> to vector<16x8xf32>
    %91 = arith.mulf %86, %90 : vector<16x8xf32>
    %cst_35 = arith.constant dense<0.000000e+00> : vector<16x6xf32>
    %92 = tpu.matmul %91, %7, %cst_35 {dimension_numbers = #tpu.dot_dimension_numbers<[1], [0], [0], [1], [0, 0, 1, 1], [], []>} : vector<16x8xf32>, vector<8x6xf32>, vector<16x6xf32> -> vector<16x6xf32>
    %c0_36 = arith.constant 0 : index
    %c0_37 = arith.constant 0 : index
    %93 = vector.load %arg6[%c0_36, %c0_37] : memref<6x12xf32, #tpu.memory_space<vmem>>, vector<6x12xf32>
    %c0_38 = arith.constant 0 : index
    %c0_39 = arith.constant 0 : index
    %94 = vector.load %arg7[%c0_38, %c0_39] : memref<1x12xf32, #tpu.memory_space<vmem>>, vector<1x12xf32>
    %cst_40 = arith.constant dense<0.000000e+00> : vector<16x12xf32>
    %95 = tpu.matmul %92, %93, %cst_40 {dimension_numbers = #tpu.dot_dimension_numbers<[1], [0], [0], [1], [0, 0, 1, 1], [], []>} : vector<16x6xf32>, vector<6x12xf32>, vector<16x12xf32> -> vector<16x12xf32>
    %96 = vector.broadcast %94 : vector<1x12xf32> to vector<16x12xf32>
    %97 = arith.addf %95, %96 : vector<16x12xf32>
    %cst_41 = arith.constant 0.000000e+00 : f32
    %98 = vector.broadcast %cst_41 : f32 to vector<16x12xf32>
    %99 = arith.maximumf %97, %98 : vector<16x12xf32>
    %c0_42 = arith.constant 0 : index
    %c0_43 = arith.constant 0 : index
    %c0_44 = arith.constant 0 : index
    %100 = vector.load %arg8[%c0_42, %c0_43, %c0_44] : memref<1x16x12xf32, #tpu.memory_space<vmem>>, vector<1x16x12xf32>
    %101 = vector.shape_cast %100 : vector<1x16x12xf32> to vector<16x12xf32>
    %102 = vector.shape_cast %99 : vector<16x12xf32> to vector<1x16x12xf32>
    tpu.vector_store %arg8[%c0_42, %c0_43, %c0_44], %102 {strides = array<i32>} : memref<1x16x12xf32, #tpu.memory_space<vmem>>, vector<1x16x12xf32>,
    return
  }
  func.func @transform_0(%arg0: i32, %arg1: i32) -> (i32, i32, i32) {
    %c0_i32 = arith.constant 0 : i32
    %c0_i32_0 = arith.constant 0 : i32
    return %arg0, %arg1, %c0_i32 : i32, i32, i32
  }
  func.func @transform_1(%arg0: i32, %arg1: i32) -> (i32, i32, i32) {
    %c0_i32 = arith.constant 0 : i32
    %c0_i32_0 = arith.constant 0 : i32
    %c0_i32_1 = arith.constant 0 : i32
    return %arg0, %c0_i32, %c0_i32_0 : i32, i32, i32
  }
  func.func @transform_2(%arg0: i32, %arg1: i32) -> (i32, i32, i32) {
    %c0_i32 = arith.constant 0 : i32
    %c0_i32_0 = arith.constant 0 : i32
    %c0_i32_1 = arith.constant 0 : i32
    return %arg0, %c0_i32, %c0_i32_0 : i32, i32, i32
  }
  func.func @transform_3(%arg0: i32, %arg1: i32) -> (i32, i32, i32) {
    %c0_i32 = arith.constant 0 : i32
    %c0_i32_0 = arith.constant 0 : i32
    %c0_i32_1 = arith.constant 0 : i32
    return %arg0, %c0_i32, %c0_i32_0 : i32, i32, i32
  }
  func.func @transform_4(%arg0: i32, %arg1: i32) -> (i32, i32) {
    %c0_i32 = arith.constant 0 : i32
    %c0_i32_0 = arith.constant 0 : i32
    %c0_i32_1 = arith.constant 0 : i32
    return %c0_i32, %c0_i32_0 : i32, i32
  }
  func.func @transform_5(%arg0: i32, %arg1: i32) -> (i32, i32) {
    %c0_i32 = arith.constant 0 : i32
    %c0_i32_0 = arith.constant 0 : i32
    %c0_i32_1 = arith.constant 0 : i32
    return %c0_i32, %c0_i32_0 : i32, i32
  }
  func.func @transform_6(%arg0: i32, %arg1: i32) -> (i32, i32, i32) {
    %c0_i32 = arith.constant 0 : i32
    %c0_i32_0 = arith.constant 0 : i32
    return %arg0, %arg1, %c0_i32 : i32, i32, i32
  }
}

module attributes {stable_mosaic.version = 11 : i64} {
  func.func @_deconv_mlp_kernel(%arg0: i32, %arg1: i32, %arg2: memref<1x32x3xf32, #tpu.memory_space<vmem>>, %arg3: memref<1x3x16xf32, #tpu.memory_space<vmem>>, %arg4: memref<1x1x16xf32, #tpu.memory_space<vmem>>, %arg5: memref<1x16x12xf32, #tpu.memory_space<vmem>>, %arg6: memref<12x12xf32, #tpu.memory_space<vmem>>, %arg7: memref<1x12xf32, #tpu.memory_space<vmem>>, %arg8: memref<12x24xf32, #tpu.memory_space<vmem>>, %arg9: memref<1x24xf32, #tpu.memory_space<vmem>>, %arg10: memref<24x16xf32, #tpu.memory_space<vmem>>, %arg11: memref<1x16xf32, #tpu.memory_space<vmem>>, %arg12: memref<1x32x16xf32, #tpu.memory_space<vmem>>) attributes {dimension_semantics = [#tpu.dimension_semantics<parallel>, #tpu.dimension_semantics<parallel>], iteration_bounds = array<i64: 2, 1>, scalar_prefetch = 0 : i64, scratch_operands = 0 : i64, tpu.core_type = #tpu.core_type<tc>, window_params = [{transform_indices = @transform_0, window_bounds = array<i64: 1, 32, 3>}, {transform_indices = @transform_1, window_bounds = array<i64: 1, 3, 16>}, {transform_indices = @transform_2, window_bounds = array<i64: 1, 1, 16>}, {transform_indices = @transform_3, window_bounds = array<i64: 1, 16, 12>}, {pipeline_mode = #tpu.pipeline_mode<synchronous>, transform_indices = @transform_4, window_bounds = array<i64: 12, 12>}, {pipeline_mode = #tpu.pipeline_mode<synchronous>, transform_indices = @transform_5, window_bounds = array<i64: 1, 12>}, {pipeline_mode = #tpu.pipeline_mode<synchronous>, transform_indices = @transform_6, window_bounds = array<i64: 12, 24>}, {pipeline_mode = #tpu.pipeline_mode<synchronous>, transform_indices = @transform_7, window_bounds = array<i64: 1, 24>}, {pipeline_mode = #tpu.pipeline_mode<synchronous>, transform_indices = @transform_8, window_bounds = array<i64: 24, 16>}, {pipeline_mode = #tpu.pipeline_mode<synchronous>, transform_indices = @transform_9, window_bounds = array<i64: 1, 16>}, {transform_indices = @transform_10, window_bounds = array<i64: 1, 32, 16>}]} {
    %c0 = arith.constant 0 : index
    %c0_0 = arith.constant 0 : index
    %c0_1 = arith.constant 0 : index
    %0 = vector.load %arg2[%c0, %c0_0, %c0_1] : memref<1x32x3xf32, #tpu.memory_space<vmem>>, vector<1x32x3xf32>
    %1 = vector.shape_cast %0 : vector<1x32x3xf32> to vector<32x3xf32>
    %c0_2 = arith.constant 0 : index
    %c0_3 = arith.constant 0 : index
    %c0_4 = arith.constant 0 : index
    %2 = vector.load %arg3[%c0_2, %c0_3, %c0_4] : memref<1x3x16xf32, #tpu.memory_space<vmem>>, vector<1x3x16xf32>
    %3 = vector.shape_cast %2 : vector<1x3x16xf32> to vector<3x16xf32>
    %c0_5 = arith.constant 0 : index
    %c0_6 = arith.constant 0 : index
    %c0_7 = arith.constant 0 : index
    %4 = vector.load %arg4[%c0_5, %c0_6, %c0_7] : memref<1x1x16xf32, #tpu.memory_space<vmem>>, vector<1x1x16xf32>
    %5 = vector.shape_cast %4 : vector<1x1x16xf32> to vector<1x16xf32>
    %c0_8 = arith.constant 0 : index
    %c0_9 = arith.constant 0 : index
    %c0_10 = arith.constant 0 : index
    %6 = vector.load %arg5[%c0_8, %c0_9, %c0_10] : memref<1x16x12xf32, #tpu.memory_space<vmem>>, vector<1x16x12xf32>
    %7 = vector.shape_cast %6 : vector<1x16x12xf32> to vector<16x12xf32>
    %cst = arith.constant dense<0.000000e+00> : vector<32x16xf32>
    %8 = tpu.matmul %1, %3, %cst {dimension_numbers = #tpu.dot_dimension_numbers<[1], [0], [0], [1], [0, 0, 1, 1], [], []>} : vector<32x3xf32>, vector<3x16xf32>, vector<32x16xf32> -> vector<32x16xf32>
    %9 = arith.mulf %1, %1 : vector<32x3xf32>
    %cst_11 = arith.constant dense<0.000000e+00> : vector<32xf32>
    %10 = vector.multi_reduction <add>, %9, %cst_11 [1] : vector<32x3xf32> to vector<32xf32>
    %11 = vector.shape_cast %10 : vector<32xf32> to vector<32x1xf32>
    %12 = vector.broadcast %11 : vector<32x1xf32> to vector<32x16xf32>
    %13 = vector.broadcast %5 : vector<1x16xf32> to vector<32x16xf32>
    %14 = arith.addf %12, %13 : vector<32x16xf32>
    %cst_12 = arith.constant 2.000000e+00 : f32
    %15 = vector.broadcast %cst_12 : f32 to vector<32x16xf32>
    %16 = arith.mulf %15, %8 : vector<32x16xf32>
    %17 = arith.subf %14, %16 : vector<32x16xf32>
    %cst_13 = arith.constant 0.000000e+00 : f32
    %18 = vector.broadcast %cst_13 : f32 to vector<32x16xf32>
    %19 = arith.maximumf %17, %18 : vector<32x16xf32>
    %20 = tpu.iota {dimensions = array<i32: 1>} : vector<32x16xi32>
    %21 = tpu.bitcast %19 : vector<32x16xf32> -> vector<32x16xi32>
    %c-16_i32 = arith.constant -16 : i32
    %22 = vector.broadcast %c-16_i32 : i32 to vector<32x16xi32>
    %23 = arith.andi %21, %22 : vector<32x16xi32>
    %24 = arith.ori %23, %20 : vector<32x16xi32>
    %cst_14 = arith.constant 0.000000e+00 : f32
    %25 = vector.broadcast %cst_14 : f32 to vector<32x16xf32>
    %cst_15 = arith.constant 0.000000e+00 : f32
    %26 = vector.broadcast %cst_15 : f32 to vector<32x1xf32>
    %cst_16 = arith.constant dense<2147483647> : vector<32xi32>
    %27 = vector.multi_reduction <minsi>, %24, %cst_16 [1] : vector<32x16xi32> to vector<32xi32>
    %28 = vector.shape_cast %27 : vector<32xi32> to vector<32x1xi32>
    %c15_i32 = arith.constant 15 : i32
    %29 = vector.broadcast %c15_i32 : i32 to vector<32x1xi32>
    %30 = arith.andi %28, %29 : vector<32x1xi32>
    %c-16_i32_17 = arith.constant -16 : i32
    %31 = vector.broadcast %c-16_i32_17 : i32 to vector<32x1xi32>
    %32 = arith.andi %28, %31 : vector<32x1xi32>
    %33 = tpu.bitcast %32 : vector<32x1xi32> -> vector<32x1xf32>
    %34 = vector.broadcast %30 : vector<32x1xi32> to vector<32x16xi32>
    %35 = arith.cmpi eq, %20, %34 : vector<32x16xi32>
    %cst_18 = arith.constant 9.99999993E-9 : f32
    %36 = vector.broadcast %cst_18 : f32 to vector<32x1xf32>
    %37 = arith.addf %33, %36 : vector<32x1xf32>
    %cst_19 = arith.constant 1.000000e+00 : f32
    %38 = vector.broadcast %cst_19 : f32 to vector<32x1xf32>
    %39 = arith.divf %38, %37 : vector<32x1xf32>
    %cst_20 = arith.constant 0.000000e+00 : f32
    %40 = vector.shape_cast %39 : vector<32x1xf32> to vector<32x1xf32>
    %41 = vector.broadcast %40 : vector<32x1xf32> to vector<32x16xf32>
    %42 = vector.broadcast %cst_20 : f32 to vector<32x16xf32>
    %43 = arith.select %35, %41, %42 : vector<32x16xi1>, vector<32x16xf32>
    %44 = arith.addf %25, %43 : vector<32x16xf32>
    %45 = arith.addf %26, %39 : vector<32x1xf32>
    %c2139095039_i32 = arith.constant 2139095039 : i32
    %46 = vector.broadcast %c2139095039_i32 : i32 to vector<32x16xi32>
    %47 = arith.select %35, %46, %24 : vector<32x16xi1>, vector<32x16xi32>
    %cst_21 = arith.constant dense<2147483647> : vector<32xi32>
    %48 = vector.multi_reduction <minsi>, %47, %cst_21 [1] : vector<32x16xi32> to vector<32xi32>
    %49 = vector.shape_cast %48 : vector<32xi32> to vector<32x1xi32>
    %c15_i32_22 = arith.constant 15 : i32
    %50 = vector.broadcast %c15_i32_22 : i32 to vector<32x1xi32>
    %51 = arith.andi %49, %50 : vector<32x1xi32>
    %c-16_i32_23 = arith.constant -16 : i32
    %52 = vector.broadcast %c-16_i32_23 : i32 to vector<32x1xi32>
    %53 = arith.andi %49, %52 : vector<32x1xi32>
    %54 = tpu.bitcast %53 : vector<32x1xi32> -> vector<32x1xf32>
    %55 = vector.broadcast %51 : vector<32x1xi32> to vector<32x16xi32>
    %56 = arith.cmpi eq, %20, %55 : vector<32x16xi32>
    %cst_24 = arith.constant 9.99999993E-9 : f32
    %57 = vector.broadcast %cst_24 : f32 to vector<32x1xf32>
    %58 = arith.addf %54, %57 : vector<32x1xf32>
    %cst_25 = arith.constant 1.000000e+00 : f32
    %59 = vector.broadcast %cst_25 : f32 to vector<32x1xf32>
    %60 = arith.divf %59, %58 : vector<32x1xf32>
    %cst_26 = arith.constant 0.000000e+00 : f32
    %61 = vector.shape_cast %60 : vector<32x1xf32> to vector<32x1xf32>
    %62 = vector.broadcast %61 : vector<32x1xf32> to vector<32x16xf32>
    %63 = vector.broadcast %cst_26 : f32 to vector<32x16xf32>
    %64 = arith.select %56, %62, %63 : vector<32x16xi1>, vector<32x16xf32>
    %65 = arith.addf %44, %64 : vector<32x16xf32>
    %66 = arith.addf %45, %60 : vector<32x1xf32>
    %c2139095039_i32_27 = arith.constant 2139095039 : i32
    %67 = vector.broadcast %c2139095039_i32_27 : i32 to vector<32x16xi32>
    %68 = arith.select %56, %67, %47 : vector<32x16xi1>, vector<32x16xi32>
    %cst_28 = arith.constant dense<2147483647> : vector<32xi32>
    %69 = vector.multi_reduction <minsi>, %68, %cst_28 [1] : vector<32x16xi32> to vector<32xi32>
    %70 = vector.shape_cast %69 : vector<32xi32> to vector<32x1xi32>
    %c15_i32_29 = arith.constant 15 : i32
    %71 = vector.broadcast %c15_i32_29 : i32 to vector<32x1xi32>
    %72 = arith.andi %70, %71 : vector<32x1xi32>
    %c-16_i32_30 = arith.constant -16 : i32
    %73 = vector.broadcast %c-16_i32_30 : i32 to vector<32x1xi32>
    %74 = arith.andi %70, %73 : vector<32x1xi32>
    %75 = tpu.bitcast %74 : vector<32x1xi32> -> vector<32x1xf32>
    %76 = vector.broadcast %72 : vector<32x1xi32> to vector<32x16xi32>
    %77 = arith.cmpi eq, %20, %76 : vector<32x16xi32>
    %cst_31 = arith.constant 9.99999993E-9 : f32
    %78 = vector.broadcast %cst_31 : f32 to vector<32x1xf32>
    %79 = arith.addf %75, %78 : vector<32x1xf32>
    %cst_32 = arith.constant 1.000000e+00 : f32
    %80 = vector.broadcast %cst_32 : f32 to vector<32x1xf32>
    %81 = arith.divf %80, %79 : vector<32x1xf32>
    %cst_33 = arith.constant 0.000000e+00 : f32
    %82 = vector.shape_cast %81 : vector<32x1xf32> to vector<32x1xf32>
    %83 = vector.broadcast %82 : vector<32x1xf32> to vector<32x16xf32>
    %84 = vector.broadcast %cst_33 : f32 to vector<32x16xf32>
    %85 = arith.select %77, %83, %84 : vector<32x16xi1>, vector<32x16xf32>
    %86 = arith.addf %65, %85 : vector<32x16xf32>
    %87 = arith.addf %66, %81 : vector<32x1xf32>
    %cst_34 = arith.constant 1.000000e+00 : f32
    %88 = vector.broadcast %cst_34 : f32 to vector<32x1xf32>
    %89 = arith.divf %88, %87 : vector<32x1xf32>
    %90 = vector.broadcast %89 : vector<32x1xf32> to vector<32x16xf32>
    %91 = arith.mulf %86, %90 : vector<32x16xf32>
    %cst_35 = arith.constant dense<0.000000e+00> : vector<32x12xf32>
    %92 = tpu.matmul %91, %7, %cst_35 {dimension_numbers = #tpu.dot_dimension_numbers<[1], [0], [0], [1], [0, 0, 1, 1], [], []>} : vector<32x16xf32>, vector<16x12xf32>, vector<32x12xf32> -> vector<32x12xf32>
    %c0_36 = arith.constant 0 : index
    %c0_37 = arith.constant 0 : index
    %93 = vector.load %arg6[%c0_36, %c0_37] : memref<12x12xf32, #tpu.memory_space<vmem>>, vector<12x12xf32>
    %c0_38 = arith.constant 0 : index
    %c0_39 = arith.constant 0 : index
    %94 = vector.load %arg7[%c0_38, %c0_39] : memref<1x12xf32, #tpu.memory_space<vmem>>, vector<1x12xf32>
    %cst_40 = arith.constant dense<0.000000e+00> : vector<32x12xf32>
    %95 = tpu.matmul %92, %93, %cst_40 {dimension_numbers = #tpu.dot_dimension_numbers<[1], [0], [0], [1], [0, 0, 1, 1], [], []>} : vector<32x12xf32>, vector<12x12xf32>, vector<32x12xf32> -> vector<32x12xf32>
    %96 = vector.broadcast %94 : vector<1x12xf32> to vector<32x12xf32>
    %97 = arith.addf %95, %96 : vector<32x12xf32>
    %cst_41 = arith.constant 0.000000e+00 : f32
    %98 = vector.broadcast %cst_41 : f32 to vector<32x12xf32>
    %99 = arith.maximumf %97, %98 : vector<32x12xf32>
    %c0_42 = arith.constant 0 : index
    %c0_43 = arith.constant 0 : index
    %100 = vector.load %arg8[%c0_42, %c0_43] : memref<12x24xf32, #tpu.memory_space<vmem>>, vector<12x24xf32>
    %c0_44 = arith.constant 0 : index
    %c0_45 = arith.constant 0 : index
    %101 = vector.load %arg9[%c0_44, %c0_45] : memref<1x24xf32, #tpu.memory_space<vmem>>, vector<1x24xf32>
    %cst_46 = arith.constant dense<0.000000e+00> : vector<32x24xf32>
    %102 = tpu.matmul %99, %100, %cst_46 {dimension_numbers = #tpu.dot_dimension_numbers<[1], [0], [0], [1], [0, 0, 1, 1], [], []>} : vector<32x12xf32>, vector<12x24xf32>, vector<32x24xf32> -> vector<32x24xf32>
    %103 = vector.broadcast %101 : vector<1x24xf32> to vector<32x24xf32>
    %104 = arith.addf %102, %103 : vector<32x24xf32>
    %cst_47 = arith.constant 0.000000e+00 : f32
    %105 = vector.broadcast %cst_47 : f32 to vector<32x24xf32>
    %106 = arith.maximumf %104, %105 : vector<32x24xf32>
    %c0_48 = arith.constant 0 : index
    %c0_49 = arith.constant 0 : index
    %107 = vector.load %arg10[%c0_48, %c0_49] : memref<24x16xf32, #tpu.memory_space<vmem>>, vector<24x16xf32>
    %c0_50 = arith.constant 0 : index
    %c0_51 = arith.constant 0 : index
    %108 = vector.load %arg11[%c0_50, %c0_51] : memref<1x16xf32, #tpu.memory_space<vmem>>, vector<1x16xf32>
    %cst_52 = arith.constant dense<0.000000e+00> : vector<32x16xf32>
    %109 = tpu.matmul %106, %107, %cst_52 {dimension_numbers = #tpu.dot_dimension_numbers<[1], [0], [0], [1], [0, 0, 1, 1], [], []>} : vector<32x24xf32>, vector<24x16xf32>, vector<32x16xf32> -> vector<32x16xf32>
    %110 = vector.broadcast %108 : vector<1x16xf32> to vector<32x16xf32>
    %111 = arith.addf %109, %110 : vector<32x16xf32>
    %cst_53 = arith.constant 0.000000e+00 : f32
    %112 = vector.broadcast %cst_53 : f32 to vector<32x16xf32>
    %113 = arith.maximumf %111, %112 : vector<32x16xf32>
    %c0_54 = arith.constant 0 : index
    %c0_55 = arith.constant 0 : index
    %c0_56 = arith.constant 0 : index
    %114 = vector.load %arg12[%c0_54, %c0_55, %c0_56] : memref<1x32x16xf32, #tpu.memory_space<vmem>>, vector<1x32x16xf32>
    %115 = vector.shape_cast %114 : vector<1x32x16xf32> to vector<32x16xf32>
    %116 = vector.shape_cast %113 : vector<32x16xf32> to vector<1x32x16xf32>
    tpu.vector_store %arg12[%c0_54, %c0_55, %c0_56], %116 {strides = array<i32>} : memref<1x32x16xf32, #tpu.memory_space<vmem>>, vector<1x32x16xf32>,
    return
  }
  func.func @transform_0(%arg0: i32, %arg1: i32) -> (i32, i32, i32) {
    %c0_i32 = arith.constant 0 : i32
    %c0_i32_0 = arith.constant 0 : i32
    return %arg0, %arg1, %c0_i32 : i32, i32, i32
  }
  func.func @transform_1(%arg0: i32, %arg1: i32) -> (i32, i32, i32) {
    %c0_i32 = arith.constant 0 : i32
    %c0_i32_0 = arith.constant 0 : i32
    %c0_i32_1 = arith.constant 0 : i32
    return %arg0, %c0_i32, %c0_i32_0 : i32, i32, i32
  }
  func.func @transform_2(%arg0: i32, %arg1: i32) -> (i32, i32, i32) {
    %c0_i32 = arith.constant 0 : i32
    %c0_i32_0 = arith.constant 0 : i32
    %c0_i32_1 = arith.constant 0 : i32
    return %arg0, %c0_i32, %c0_i32_0 : i32, i32, i32
  }
  func.func @transform_3(%arg0: i32, %arg1: i32) -> (i32, i32, i32) {
    %c0_i32 = arith.constant 0 : i32
    %c0_i32_0 = arith.constant 0 : i32
    %c0_i32_1 = arith.constant 0 : i32
    return %arg0, %c0_i32, %c0_i32_0 : i32, i32, i32
  }
  func.func @transform_4(%arg0: i32, %arg1: i32) -> (i32, i32) {
    %c0_i32 = arith.constant 0 : i32
    %c0_i32_0 = arith.constant 0 : i32
    %c0_i32_1 = arith.constant 0 : i32
    return %c0_i32, %c0_i32_0 : i32, i32
  }
  func.func @transform_5(%arg0: i32, %arg1: i32) -> (i32, i32) {
    %c0_i32 = arith.constant 0 : i32
    %c0_i32_0 = arith.constant 0 : i32
    %c0_i32_1 = arith.constant 0 : i32
    return %c0_i32, %c0_i32_0 : i32, i32
  }
  func.func @transform_6(%arg0: i32, %arg1: i32) -> (i32, i32) {
    %c0_i32 = arith.constant 0 : i32
    %c0_i32_0 = arith.constant 0 : i32
    %c0_i32_1 = arith.constant 0 : i32
    return %c0_i32, %c0_i32_0 : i32, i32
  }
  func.func @transform_7(%arg0: i32, %arg1: i32) -> (i32, i32) {
    %c0_i32 = arith.constant 0 : i32
    %c0_i32_0 = arith.constant 0 : i32
    %c0_i32_1 = arith.constant 0 : i32
    return %c0_i32, %c0_i32_0 : i32, i32
  }
  func.func @transform_8(%arg0: i32, %arg1: i32) -> (i32, i32) {
    %c0_i32 = arith.constant 0 : i32
    %c0_i32_0 = arith.constant 0 : i32
    %c0_i32_1 = arith.constant 0 : i32
    return %c0_i32, %c0_i32_0 : i32, i32
  }
  func.func @transform_9(%arg0: i32, %arg1: i32) -> (i32, i32) {
    %c0_i32 = arith.constant 0 : i32
    %c0_i32_0 = arith.constant 0 : i32
    %c0_i32_1 = arith.constant 0 : i32
    return %c0_i32, %c0_i32_0 : i32, i32
  }
  func.func @transform_10(%arg0: i32, %arg1: i32) -> (i32, i32, i32) {
    %c0_i32 = arith.constant 0 : i32
    %c0_i32_0 = arith.constant 0 : i32
    return %arg0, %arg1, %c0_i32 : i32, i32, i32
  }
}

</mosaic_0001>

<bundles_post_ra>
// kernel: custom-call.8
= control target key start
LH: loop header
LB: loop body
LE: loop exit
PB: predicated region body
PF: predicated region fallthrough
CT: control target
= control target key end

     0   :  { %s6_s0 = inlined_call_operand.vmem [shape: f32[2,32], index: 0, kind: output, shape index: {}]  }

// kernel: custom-call.9
= control target key start
LH: loop header
LB: loop body
LE: loop exit
PB: predicated region body
PF: predicated region fallthrough
CT: control target
= control target key end

     0   :  { %s6_s0 = inlined_call_operand.vmem [shape: f32[2,16], index: 0, kind: output, shape index: {}]  }

// kernel: hyper_decoder_forward.2
= control target key start
LH: loop header
LB: loop body
LE: loop exit
PB: predicated region body
PF: predicated region fallthrough
CT: control target
= control target key end

     0   :  { %s988_s21 = smov 0   ;;  %s990_s22 = smov 0   ;;  %s1132_s0 = inlined_call_operand.vmem [shape: f32[2,16,3], index: 0, kind: input, shape index: {}]   ;;  %s1133_s1 = inlined_call_operand.vmem [shape: f32[2,3,8], index: 1, kind: input, shape index: {}]   ;;  %s1134_s2 = inlined_call_operand.vmem [shape: f32[2,1,8], index: 2, kind: input, shape index: {}]   ;;  %s1135_s3 = inlined_call_operand.vmem [shape: f32[2,8,6], index: 3, kind: input, shape index: {}]   ;;  %s1136_s4 = inlined_call_operand.vmem [shape: f32[6,12], index: 4, kind: input, shape index: {}]   ;;  %s1137_s5 = inlined_call_operand.vmem [shape: f32[1,12], index: 5, kind: input, shape index: {}]   ;;  %s1138_s6 = inlined_call_operand.vmem [shape: f32[2,16,12], index: 6, kind: output, shape index: {}]  }
   0x1   :  { %s992_s23 = smov 0  }
   0x2 LB: > { %s28_s24 = sadd.s32 1, %s947_s22  ;;  %p867_p0 = scmp.ge.s32.totalorder %s951_s23, 1  ;;  %s951_s23 = sphi %s992_s23, %s16_s23   ;;  %s947_s22 = sphi %s990_s22, %s1148_s22   ;;  %s943_s21 = sphi %s988_s21, %s1147_s21  }
   0x3   : > { %p30_p1 = scmp.ge.s32.totalorder %s28_s24, 2  ;;  %p259_p2 = scmp.lt.s32.totalorder %s951_s23, 3 }
   0x5   : > { %s1150_s24 = smov (%p30_p1, %s28_s24), 0  ;;  %p260_p3 = pnand %p867_p0, %p259_p2 }
   0x6   : > { %p309_p4 = scmp.lt.s32.totalorder (!%p260_p3), %s943_s21, 1 }
   0x7   : > { %263 = sbr.rel (%p260_p3) target bundleno = 1203 (0x4b3), region = 44 }
   0xc   : > { %s1152_s21 = smov (!%p309_p4, %s943_s21), 1  ;;  %vm351_vm0 = vcmask 1042432   ;;  %vm344_vm1 = vcmask 23552   ;;  %v397_v12 = vlaneseq  ;;  %vm405_vm2 = vcmask 64512  }
   0xd   : > { %s870_s25 = sshll.u32 %s1152_s21, 2  ;;  %s884_s26 = sshll.u32 %s1152_s21, 4 }
   0xe   : > { %s321_s29 = scalar_lea.vmem %s1133_s1, %s870_s25  ;;  %s316_s8 = scalar_lea.vmem %s1132_s0, %s884_s26  ;;  %v1022_v16 = vand.u32 127, %v397_v12 }
   0xf   : > { %v341_v0 = vld [vmem:[%s321_s29] sm:$0x7]  ;;  %v340_v2 = vld [vmem:[%s316_s8 + $0x8] sm:$0xff]  ;;  %s324_s11 = scalar_lea.vmem %s1134_s2, %s1152_s21  ;;  %s871_s12 = sshll.u32 %s1152_s21, 3 }
  0x10   : > { %v339_v1 = vld [vmem:[%s316_s8] sm:$0xff]  ;;  %874 = vmatpush.msk.msra.mxu0 %vm351_vm0, %v341_v0  ;;  %886 = vmatpush.msk.msra.mxu3 %vm351_vm0, %v341_v0  ;;  %v379_v5 = vmul.f32 %v340_v2, %v340_v2  ;;  %s328_s15 = scalar_lea.vmem %s1135_s3, %s871_s12  ;;  %s337_s27 = scalar_lea.vmem %s1138_s6, %s884_s26 }
  0x11   : > { %v378_v3 = vmul.f32 %v339_v1, %v339_v1  ;;  %875 = vmatmul.msk.f32.vlgmr.msra.gmra.mxu0 %vm344_vm1, %v339_v1  ;;  %876 = vmatmul.msk.f32.vlgmr.msra.gmra.mxu3 %vm344_vm1, %v340_v2  ;;  %v911_v8 = vld [vmem:[%s324_s11] ss:$0 sm:$0xff] }
  0x12   : > { %v383_v6 = vsel %vm344_vm1, %v379_v5, 0.0 }
  0x13   : > { %v380_v4 = vsel %vm344_vm1, %v378_v3, 0.0 }
  0x14   : > { %381 = vadd.xlane.f32.xlu0 %v380_v4 }
  0x1c   : > { %384 = vadd.xlane.f32.xlu0 %v383_v6 }
  0x87   : > { %v382_v7 = vpop.xlane.xlu0 %381 }
  0x88   : > { %v389_v9 = vadd.f32 %v911_v8, %v382_v7 }
  0x8e   : > { %v372_v10 = vpop.f32.mrf.mxu0 }
  0x8f   : > { %v391_v11 = vmul.f32 2.0, %v372_v10  ;;  %v385_v13 = vpop.xlane.xlu0 %384 }
  0x90   : > { %v390_v17 = vadd.f32 %v911_v8, %v385_v13 }
  0x91   : > { %v393_v14 = vsub.f32 %v389_v9, %v391_v11 }
  0x93   : > { %v395_v15 = vmax.f32 %v393_v14, 0.0 }
  0x94   : > { %v375_v18 = vpop.f32.mrf.mxu3 }
  0x95   : > { %v401_v19 = vand.u32 4294967288, %v395_v15  ;;  %v392_v20 = vmul.f32 2.0, %v375_v18 }
  0x97   : > { %v403_v21 = vor.u32 %v401_v19, %v1022_v16  ;;  %v394_v22 = vsub.f32 %v390_v17, %v392_v20 }
  0x99   : > { %v396_v23 = vmax.f32 %v394_v22, 0.0  ;;  %v406_v24 = vsel %vm405_vm2, %v403_v21, 2147483647 }
  0x9a   : > { %v408_v25 = vshra.s32 %v406_v24, 16  ;;  %v407_v32 = vand.u32 65535, %v406_v24 }
  0x9b   : > { %v402_v26 = vand.u32 4294967288, %v396_v23 }
  0x9c   : > { %v410_v27 = vcvt.s32.f32 %v408_v25  ;;  %v409_v34 = vcvt.s32.f32 %v407_v32 }
  0x9d   : > { %v404_v28 = vor.u32 %v402_v26, %v1022_v16 }
  0x9e   : > { %411 = vmin.xlane.f32.xlu1 %v410_v27 }
  0x9f   : > { %v421_v29 = vsel %vm405_vm2, %v404_v28, 2147483647 }
  0xa0   : > { %v423_v30 = vshra.s32 %v421_v29, 16  ;;  %v422_v36 = vand.u32 65535, %v421_v29 }
  0xa2   : > { %v425_v31 = vcvt.s32.f32 %v423_v30  ;;  %v424_v38 = vcvt.s32.f32 %v422_v36 }
  0xa6   : > { %426 = vmin.xlane.f32.xlu1 %v425_v31 }
 0x111   : > { %v412_v33 = vpop.xlane.xlu1 %411 }
 0x112   : > { %vm413_vm3 = vcmp.eq.f32.partialorder %v410_v27, %v412_v33  ;;  %v418_v40 = vcvt.f32.s32 %v412_v33 }
 0x113   : > { %v414_v35 = vsel %vm413_vm3, %v409_v34, inf }
 0x114   : > { %415 = vmin.xlane.f32.xlu2 %v414_v35  ;;  %v419_v42 = vshll.u32 %v418_v40, 16 }
 0x119   : > { %v427_v37 = vpop.xlane.xlu1 %426 }
 0x11a   : > { %vm428_vm4 = vcmp.eq.f32.partialorder %v425_v31, %v427_v37  ;;  %v433_v45 = vcvt.f32.s32 %v427_v37 }
 0x11b   : > { %v429_v39 = vsel %vm428_vm4, %v424_v38, inf }
 0x11c   : > { %430 = vmin.xlane.f32.xlu2 %v429_v39  ;;  %v434_v52 = vshll.u32 %v433_v45, 16 }
 0x187   : > { %v416_v41 = vpop.xlane.xlu2 %415 }
 0x188   : > { %v417_v43 = vcvt.f32.s32 %v416_v41 }
 0x18a   : > { %v420_v44 = vadd.s32 %v419_v42, %v417_v43 }
 0x18c   : > { %v436_v46 = vand.u32 7, %v420_v44  ;;  %v438_v47 = vand.u32 4294967288, %v420_v44 }
 0x18e   : > { %v444_v48 = vadd.f32 1e-08, %v438_v47  ;;  %vm1029_vm5 = vcmp.eq.s32.totalorder %v1022_v16, %v436_v46 }
 0x18f   : > { %v431_v50 = vpop.xlane.xlu2 %430  ;;  %v1035_v51 = vsel %vm1029_vm5, 2139095039, %v403_v21 }
 0x190   : > { %913 = vrcp.f32 %v444_v48  ;;  %v432_v53 = vcvt.f32.s32 %v431_v50  ;;  %v484_v54 = vsel %vm405_vm2, %v1035_v51, 2147483647  ;;  %v457_v3 = vand.u32 2147483648, %v444_v48 }
 0x191   : > { %v486_v56 = vshra.s32 %v484_v54, 16  ;;  %v455_v6 = vand.u32 2147483647, %v444_v48  ;;  %vm451_vm8 = vweird.f32 %v444_v48  ;;  %v485_v25 = vand.u32 65535, %v484_v54 }
 0x192   : > { %v435_v55 = vadd.s32 %v434_v52, %v432_v53  ;;  %v458_v10 = vor.u32 1.1754944e-38, %v457_v3 }
 0x193   : > { %v488_v59 = vcvt.s32.f32 %v486_v56  ;;  %vm456_vm10 = vcmp.eq.f32.partialorder %v455_v6, 8.507059e+37  ;;  %v487_v27 = vcvt.s32.f32 %v485_v25 }
 0x194   : > { %v437_v57 = vand.u32 7, %v435_v55  ;;  %v439_v58 = vand.u32 4294967288, %v435_v55 }
 0x195   : > { %489 = vmin.xlane.f32.xlu0 %v488_v59 }
 0x196   : > { %v914_v60 = vpop.eup %913  ;;  %v445_v61 = vadd.f32 1e-08, %v439_v58  ;;  %vm1040_vm6 = vcmp.eq.s32.totalorder %v1022_v16, %v437_v57 }
 0x197   : > { %v447_v63 = vmul.f32 %v914_v60, %v444_v48  ;;  %v1046_v0 = vsel %vm1040_vm6, 2139095039, %v404_v28  ;;  %vm452_vm7 = vweird.f32 %v914_v60 }
 0x198   : > { %915 = vrcp.f32 %v445_v61  ;;  %v499_v2 = vsel %vm405_vm2, %v1046_v0, 2147483647  ;;  %vm453_vm9 = vmor %vm451_vm8, %vm452_vm7  ;;  %v472_v17 = vand.u32 2147483648, %v445_v61  ;;  %v470_v19 = vand.u32 2147483647, %v445_v61 }
 0x199   : > { %v448_v1 = vsub.f32 1.0, %v447_v63  ;;  %v501_v4 = vshra.s32 %v499_v2, 16  ;;  %vm466_vm12 = vweird.f32 %v445_v61  ;;  %v500_v29 = vand.u32 65535, %v499_v2 }
 0x19a   : > { %v473_v21 = vor.u32 1.1754944e-38, %v472_v17  ;;  %vm471_vm14 = vcmp.eq.f32.partialorder %v470_v19, 8.507059e+37 }
 0x19b   : > { %v449_v5 = vmul.f32 %v914_v60, %v448_v1  ;;  %v503_v7 = vcvt.s32.f32 %v501_v4  ;;  %v502_v31 = vcvt.s32.f32 %v500_v29 }
 0x19d   : > { %v450_v8 = vadd.f32 %v914_v60, %v449_v5  ;;  %504 = vmin.xlane.f32.xlu1 %v503_v7 }
 0x19e   : > { %v916_v9 = vpop.eup %915 }
 0x19f   : > { %v462_v11 = vmul.f32 %v916_v9, %v445_v61  ;;  %v454_v12 = vsel %vm453_vm9, %v914_v60, %v450_v8  ;;  %vm467_vm11 = vweird.f32 %v916_v9 }
 0x1a0   : > { %v1050_v13 = vsel %vm456_vm10, %v458_v10, %v454_v12  ;;  %vm468_vm13 = vmor %vm466_vm12, %vm467_vm11 }
 0x1a1   : > { %v476_v14 = vsel %vm1029_vm5, %v1050_v13, 0.0  ;;  %v463_v15 = vsub.f32 1.0, %v462_v11 }
 0x1a3   : > { %v464_v18 = vmul.f32 %v916_v9, %v463_v15 }
 0x1a5   : > { %v465_v20 = vadd.f32 %v916_v9, %v464_v18 }
 0x1a7   : > { %v469_v22 = vsel %vm468_vm13, %v916_v9, %v465_v20 }
 0x1a8   : > { %v1055_v23 = vsel %vm471_vm14, %v473_v21, %v469_v22 }
 0x1a9   : > { %v477_v24 = vsel %vm1040_vm6, %v1055_v23, 0.0 }
 0x208   : > { %v490_v26 = vpop.xlane.xlu0 %489 }
 0x209   : > { %vm491_vm15 = vcmp.eq.f32.partialorder %v488_v59, %v490_v26  ;;  %v496_v33 = vcvt.f32.s32 %v490_v26 }
 0x20a   : > { %v492_v28 = vsel %vm491_vm15, %v487_v27, inf }
 0x20b   : > { %493 = vmin.xlane.f32.xlu2 %v492_v28  ;;  %v497_v35 = vshll.u32 %v496_v33, 16 }
 0x210   : > { %v505_v30 = vpop.xlane.xlu1 %504 }
 0x211   : > { %vm506_vm0 = vcmp.eq.f32.partialorder %v503_v7, %v505_v30  ;;  %v511_v38 = vcvt.f32.s32 %v505_v30 }
 0x212   : > { %v507_v32 = vsel %vm506_vm0, %v502_v31, inf }
 0x213   : > { %508 = vmin.xlane.f32.xlu0 %v507_v32  ;;  %v512_v45 = vshll.u32 %v511_v38, 16 }
 0x27e   : > { %v494_v34 = vpop.xlane.xlu2 %493 }
 0x27f   : > { %v495_v36 = vcvt.f32.s32 %v494_v34 }
 0x281   : > { %v498_v37 = vadd.s32 %v497_v35, %v495_v36  ;;  %v343_v36 = vld [vmem:[%s328_s15] sm:$0xff] }
 0x282   : > { %691 = vmatpush.msra.mxu1 %v343_v36 }
 0x283   : > { %v514_v39 = vand.u32 7, %v498_v37  ;;  %v516_v40 = vand.u32 4294967288, %v498_v37 }
 0x285   : > { %v522_v41 = vadd.f32 1e-08, %v516_v40  ;;  %vm1061_vm1 = vcmp.eq.s32.totalorder %v1022_v16, %v514_v39 }
 0x286   : > { %v509_v43 = vpop.xlane.xlu0 %508  ;;  %v560_v44 = vsel %vm1061_vm1, 2139095039, %v1035_v51 }
 0x287   : > { %917 = vrcp.f32 %v522_v41  ;;  %v510_v46 = vcvt.f32.s32 %v509_v43  ;;  %v562_v47 = vsel %vm405_vm2, %v560_v44, 2147483647  ;;  %v535_v61 = vand.u32 2147483648, %v522_v41 }
 0x288   : > { %v564_v50 = vshra.s32 %v562_v47, 16  ;;  %v533_v2 = vand.u32 2147483647, %v522_v41  ;;  %vm529_vm7 = vweird.f32 %v522_v41 }
 0x289   : > { %v513_v48 = vadd.s32 %v512_v45, %v510_v46  ;;  %v536_v6 = vor.u32 1.1754944e-38, %v535_v61 }
 0x28a   : > { %v566_v54 = vcvt.s32.f32 %v564_v50  ;;  %vm534_vm9 = vcmp.eq.f32.partialorder %v533_v2, 8.507059e+37 }
 0x28b   : > { %v515_v52 = vand.u32 7, %v513_v48  ;;  %v517_v53 = vand.u32 4294967288, %v513_v48 }
 0x28c   : > { %567 = vmin.xlane.f32.xlu1 %v566_v54 }
 0x28d   : > { %v918_v55 = vpop.eup %917  ;;  %v523_v56 = vadd.f32 1e-08, %v517_v53  ;;  %vm1070_vm3 = vcmp.eq.s32.totalorder %v1022_v16, %v515_v52 }
 0x28e   : > { %v525_v58 = vmul.f32 %v918_v55, %v522_v41  ;;  %v561_v51 = vsel %vm1070_vm3, 2139095039, %v1046_v0  ;;  %vm530_vm4 = vweird.f32 %v918_v55 }
 0x28f   : > { %919 = vrcp.f32 %v523_v56  ;;  %v577_v60 = vsel %vm405_vm2, %v561_v51, 2147483647  ;;  %vm531_vm8 = vmor %vm529_vm7, %vm530_vm4  ;;  %v550_v15 = vand.u32 2147483648, %v523_v56  ;;  %v548_v18 = vand.u32 2147483647, %v523_v56 }
 0x290   : > { %v526_v59 = vsub.f32 1.0, %v525_v58  ;;  %v579_v63 = vshra.s32 %v577_v60, 16  ;;  %vm544_vm11 = vweird.f32 %v523_v56  ;;  %v578_v29 = vand.u32 65535, %v577_v60 }
 0x291   : > { %v551_v20 = vor.u32 1.1754944e-38, %v550_v15  ;;  %vm549_vm13 = vcmp.eq.f32.partialorder %v548_v18, 8.507059e+37 }
 0x292   : > { %v527_v1 = vmul.f32 %v918_v55, %v526_v59  ;;  %v581_v3 = vcvt.s32.f32 %v579_v63  ;;  %v580_v31 = vcvt.s32.f32 %v578_v29 }
 0x294   : > { %v528_v4 = vadd.f32 %v918_v55, %v527_v1  ;;  %582 = vmin.xlane.f32.xlu2 %v581_v3 }
 0x295   : > { %v920_v5 = vpop.eup %919 }
 0x296   : > { %v540_v7 = vmul.f32 %v920_v5, %v523_v56  ;;  %v532_v8 = vsel %vm531_vm8, %v918_v55, %v528_v4  ;;  %vm545_vm10 = vweird.f32 %v920_v5 }
 0x297   : > { %v537_v0 = vsel %vm534_vm9, %v536_v6, %v532_v8  ;;  %vm546_vm12 = vmor %vm544_vm11, %vm545_vm10 }
 0x298   : > { %v1079_v9 = vadd.f32 %v537_v0, %v1050_v13  ;;  %v554_v10 = vsel %vm1061_vm1, %v537_v0, 0.0  ;;  %v541_v11 = vsub.f32 1.0, %v540_v7 }
 0x299   : > { %v1087_v12 = vadd.f32 %v554_v10, %v476_v14  ;;  %v563_v14 = vand.u32 65535, %v562_v47 }
 0x29a   : > { %v542_v17 = vmul.f32 %v920_v5, %v541_v11 }
 0x29b   : > { %v565_v27 = vcvt.s32.f32 %v563_v14 }
 0x29c   : > { %v543_v19 = vadd.f32 %v920_v5, %v542_v17 }
 0x29e   : > { %v547_v21 = vsel %vm546_vm12, %v920_v5, %v543_v19 }
 0x29f   : > { %v552_v22 = vsel %vm549_vm13, %v551_v20, %v547_v21 }
 0x2a0   : > { %v1090_v25 = vadd.f32 %v552_v22, %v1055_v23  ;;  %v555_v49 = vsel %vm1070_vm3, %v552_v22, 0.0 }
 0x2a1   : > { %v1098_v13 = vadd.f32 %v555_v49, %v477_v24 }
 0x2ff   : > { %v568_v26 = vpop.xlane.xlu1 %567 }
 0x300   : > { %vm569_vm5 = vcmp.eq.f32.partialorder %v566_v54, %v568_v26  ;;  %v574_v33 = vcvt.f32.s32 %v568_v26 }
 0x301   : > { %v570_v28 = vsel %vm569_vm5, %v565_v27, inf }
 0x302   : > { %571 = vmin.xlane.f32.xlu0 %v570_v28  ;;  %v575_v62 = vshll.u32 %v574_v33, 16 }
 0x307   : > { %v583_v30 = vpop.xlane.xlu2 %582 }
 0x308   : > { %vm584_vm14 = vcmp.eq.f32.partialorder %v581_v3, %v583_v30  ;;  %v589_v37 = vcvt.f32.s32 %v583_v30 }
 0x309   : > { %v585_v32 = vsel %vm584_vm14, %v580_v31, inf }
 0x30a   : > { %586 = vmin.xlane.f32.xlu1 %v585_v32  ;;  %v590_v40 = vshll.u32 %v589_v37, 16 }
 0x375   : > { %v572_v34 = vpop.xlane.xlu0 %571 }
 0x376   : > { %v573_v35 = vcvt.f32.s32 %v572_v34  ;;  %v699_v34 = vld [vmem:[%s1136_s4] sm:$0x3f] }
 0x378   : > { %v576_v23 = vadd.s32 %v575_v62, %v573_v35 }
 0x37a   : > { %v594_v24 = vand.u32 4294967288, %v576_v23  ;;  %v592_v7 = vand.u32 7, %v576_v23  ;;  %v912_v23 = vld [vmem:[%s1137_s5] ss:$0 sm:$0xff] }
 0x37c   : > { %v600_v38 = vadd.f32 1e-08, %v594_v24  ;;  %vm598_vm10 = vcmp.eq.s32.totalorder %v1022_v16, %v592_v7 }
 0x37d   : > { %v587_v39 = vpop.xlane.xlu1 %586 }
 0x37e   : > { %921 = vrcp.f32 %v600_v38  ;;  %v588_v41 = vcvt.f32.s32 %v587_v39  ;;  %v613_v48 = vand.u32 2147483648, %v600_v38  ;;  %v611_v52 = vand.u32 2147483647, %v600_v38 }
 0x37f   : > { %vm607_vm15 = vweird.f32 %v600_v38 }
 0x380   : > { %v591_v42 = vadd.s32 %v590_v40, %v588_v41  ;;  %v614_v54 = vor.u32 1.1754944e-38, %v613_v48  ;;  %vm612_vm1 = vcmp.eq.f32.partialorder %v611_v52, 8.507059e+37 }
 0x382   : > { %v595_v43 = vand.u32 4294967288, %v591_v42  ;;  %v593_v1 = vand.u32 7, %v591_v42 }
 0x384   : > { %v922_v44 = vpop.eup %921  ;;  %v601_v46 = vadd.f32 1e-08, %v595_v43  ;;  %vm599_vm9 = vcmp.eq.s32.totalorder %v1022_v16, %v593_v1 }
 0x385   : > { %v603_v45 = vmul.f32 %v922_v44, %v600_v38  ;;  %vm608_vm6 = vweird.f32 %v922_v44 }
 0x386   : > { %923 = vrcp.f32 %v601_v46  ;;  %vm609_vm0 = vmor %vm607_vm15, %vm608_vm6  ;;  %v628_v60 = vand.u32 2147483648, %v601_v46  ;;  %v626_v63 = vand.u32 2147483647, %v601_v46  ;;  %vm622_vm4 = vweird.f32 %v601_v46 }
 0x387   : > { %v604_v47 = vsub.f32 1.0, %v603_v45 }
 0x388   : > { %v629_v3 = vor.u32 1.1754944e-38, %v628_v60  ;;  %vm627_vm8 = vcmp.eq.f32.partialorder %v626_v63, 8.507059e+37 }
 0x389   : > { %v605_v50 = vmul.f32 %v922_v44, %v604_v47 }
 0x38b   : > { %v606_v53 = vadd.f32 %v922_v44, %v605_v50 }
 0x38c   : > { %v924_v55 = vpop.eup %923 }
 0x38d   : > { %v610_v56 = vsel %vm609_vm0, %v922_v44, %v606_v53  ;;  %v618_v58 = vmul.f32 %v924_v55, %v601_v46  ;;  %vm623_vm3 = vweird.f32 %v924_v55 }
 0x38e   : > { %v615_v57 = vsel %vm612_vm1, %v614_v54, %v610_v56  ;;  %vm624_vm7 = vmor %vm622_vm4, %vm623_vm3  ;;  %vm711_vm1 = vcmask 1045504   ;;  %vm704_vm3 = vcmask 48128  }
 0x38f   : > { %v636_v51 = vadd.f32 %v615_v57, %v1079_v9  ;;  %v619_v59 = vsub.f32 1.0, %v618_v58  ;;  %v632_v19 = vsel %vm598_vm10, %v615_v57, 0.0  ;;  %879 = vmatpush.msk.msra.mxu2 %vm711_vm1, %v699_v34 }
 0x390   : > { %v634_v49 = vadd.f32 %v632_v19, %v1087_v12 }
 0x391   : > { %925 = vrcp.f32 %v636_v51  ;;  %v620_v61 = vmul.f32 %v924_v55, %v619_v59  ;;  %v649_v15 = vand.u32 2147483648, %v636_v51  ;;  %v647_v18 = vand.u32 2147483647, %v636_v51 }
 0x392   : > { %vm643_vm12 = vweird.f32 %v636_v51 }
 0x393   : > { %v621_v2 = vadd.f32 %v924_v55, %v620_v61  ;;  %v650_v21 = vor.u32 1.1754944e-38, %v649_v15  ;;  %vm648_vm5 = vcmp.eq.f32.partialorder %v647_v18, 8.507059e+37 }
 0x395   : > { %v625_v4 = vsel %vm624_vm7, %v924_v55, %v621_v2 }
 0x396   : > { %v630_v6 = vsel %vm627_vm8, %v629_v3, %v625_v4 }
 0x397   : > { %v926_v5 = vpop.eup %925  ;;  %v633_v8 = vsel %vm599_vm9, %v630_v6, 0.0  ;;  %v637_v0 = vadd.f32 %v630_v6, %v1090_v25 }
 0x398   : > { %v639_v9 = vmul.f32 %v926_v5, %v636_v51  ;;  %v635_v10 = vadd.f32 %v633_v8, %v1098_v13  ;;  %vm644_vm11 = vweird.f32 %v926_v5 }
 0x399   : > { %927 = vrcp.f32 %v637_v0  ;;  %vm645_vm13 = vmor %vm643_vm12, %vm644_vm11  ;;  %v664_v16 = vand.u32 2147483648, %v637_v0  ;;  %v662_v29 = vand.u32 2147483647, %v637_v0  ;;  %vm658_vm6 = vweird.f32 %v637_v0 }
 0x39a   : > { %v640_v11 = vsub.f32 1.0, %v639_v9 }
 0x39b   : > { %v665_v31 = vor.u32 1.1754944e-38, %v664_v16  ;;  %vm663_vm0 = vcmp.eq.f32.partialorder %v662_v29, 8.507059e+37 }
 0x39c   : > { %v641_v17 = vmul.f32 %v926_v5, %v640_v11 }
 0x39e   : > { %v642_v20 = vadd.f32 %v926_v5, %v641_v17 }
 0x39f   : > { %v928_v22 = vpop.eup %927 }
 0x3a0   : > { %v646_v25 = vsel %vm645_vm13, %v926_v5, %v642_v20  ;;  %v654_v13 = vmul.f32 %v928_v22, %v637_v0  ;;  %vm659_vm14 = vweird.f32 %v928_v22 }
 0x3a1   : > { %v651_v14 = vsel %vm648_vm5, %v650_v21, %v646_v25  ;;  %vm660_vm15 = vmor %vm658_vm6, %vm659_vm14 }
 0x3a2   : > { %v668_v26 = vmul.f32 %v651_v14, %v634_v49  ;;  %v655_v27 = vsub.f32 1.0, %v654_v13 }
 0x3a4   : > { %877 = vmatmul.msk.f32.vlgmr.msra.gmra.mxu1 %vm405_vm2, %v668_v26  ;;  %v656_v28 = vmul.f32 %v928_v22, %v655_v27 }
 0x3a6   : > { %v657_v30 = vadd.f32 %v928_v22, %v656_v28 }
 0x3a8   : > { %v661_v32 = vsel %vm660_vm15, %v928_v22, %v657_v30 }
 0x3a9   : > { %v666_v12 = vsel %vm663_vm0, %v665_v31, %v661_v32 }
 0x3aa   : > { %v669_v33 = vmul.f32 %v666_v12, %v635_v10 }
 0x3ac   : > { %878 = vmatmul.msk.f32.gmra.mxu1 %vm405_vm2, %v669_v33  ;;  %vm740_vm2 = vcmask 97280  }
 0x421   : > { %v693_v62 = vpop.f32.mrf.mxu1 }
 0x422   : > { %880 = vmatmul.msk.f32.vlgmr.msra.gmra.mxu2 %vm704_vm3, %v693_v62 }
 0x429   : > { %v696_v35 = vpop.f32.mrf.mxu1 }
 0x42a   : > { %881 = vmatmul.msk.f32.gmra.mxu2 %vm704_vm3, %v696_v35 }
 0x4a5   : > { %v732_v24 = vpop.f32.mrf.mxu2 }
 0x4a6   : > { %v733_v36 = vadd.f32 %v912_v23, %v732_v24 }
 0x4a8   : > { %v738_v37 = vmax.f32 %v733_v36, 0.0 }
 0x4aa   : > { %741 = vst.msk [vmem:[%s337_s27] sm:$0xff] %vm740_vm2, %v738_v37 }
 0x4ad   : > { %v735_v38 = vpop.f32.mrf.mxu2 }
 0x4ae   : > { %v736_v39 = vadd.f32 %v912_v23, %v735_v38 }
 0x4b0   : > { %v739_v40 = vmax.f32 %v736_v39, 0.0 }
 0x4b2   : > { %742 = vst.msk [vmem:[%s337_s27 + $0x8] sm:$0xff] %vm740_vm2, %v739_v40 }
 0x4b3 PF: > { %s16_s23 = sadd.s32 1, %s951_s23   ;;  %s1147_s21 = smov %s947_s22 }
 0x4b4   : > { %p13_p5 = scmp.ge.s32.totalorder %s16_s23, 4   ;;  %s1148_s22 = smov %s1150_s24 }
 0x4b6   :  { %15 = sbr.rel (!%p13_p5) target bundleno = 2 (0x2), region = 83 }

// kernel: hyper_decoder_forward.3
= control target key start
LH: loop header
LB: loop body
LE: loop exit
PB: predicated region body
PF: predicated region fallthrough
CT: control target
= control target key end

     0   :  { %s1592_s13 = smov 0   ;;  %s1594_s14 = smov 0   ;;  %s2041_s0 = inlined_call_operand.vmem [shape: f32[2,32,3], index: 0, kind: input, shape index: {}]   ;;  %s2042_s1 = inlined_call_operand.vmem [shape: f32[2,3,16], index: 1, kind: input, shape index: {}]   ;;  %s2043_s2 = inlined_call_operand.vmem [shape: f32[2,1,16], index: 2, kind: input, shape index: {}]   ;;  %s2044_s3 = inlined_call_operand.vmem [shape: f32[2,16,12], index: 3, kind: input, shape index: {}]   ;;  %s2045_s4 = inlined_call_operand.vmem [shape: f32[12,12], index: 4, kind: input, shape index: {}]   ;;  %s2046_s5 = inlined_call_operand.vmem [shape: f32[1,12], index: 5, kind: input, shape index: {}]   ;;  %s2047_s6 = inlined_call_operand.vmem [shape: f32[12,24], index: 6, kind: input, shape index: {}]   ;;  %s2048_s7 = inlined_call_operand.vmem [shape: f32[1,24], index: 7, kind: input, shape index: {}]   ;;  %s2049_s8 = inlined_call_operand.vmem [shape: f32[24,16], index: 8, kind: input, shape index: {}]   ;;  %s2050_s9 = inlined_call_operand.vmem [shape: f32[1,16], index: 9, kind: input, shape index: {}]   ;;  %s2051_s10 = inlined_call_operand.vmem [shape: f32[2,32,16], index: 10, kind: output, shape index: {}]  }
   0x1   :  { %s1596_s15 = smov 0  }
   0x2 LB: > { %s32_s16 = sadd.s32 1, %s1531_s14  ;;  %p1414_p0 = scmp.ge.s32.totalorder %s1535_s15, 1  ;;  %s1535_s15 = sphi %s1596_s15, %s20_s15   ;;  %s1531_s14 = sphi %s1594_s14, %s2077_s14   ;;  %s1527_s13 = sphi %s1592_s13, %s2076_s13  }
   0x3   : > { %p34_p1 = scmp.ge.s32.totalorder %s32_s16, 2  ;;  %p360_p2 = scmp.lt.s32.totalorder %s1535_s15, 3 }
   0x5   : > { %s2079_s16 = smov (%p34_p1, %s32_s16), 0  ;;  %p361_p3 = pnand %p1414_p0, %p360_p2 }
   0x6   : > { %p419_p4 = scmp.lt.s32.totalorder (!%p361_p3), %s1527_s13, 1 }
   0x7   : > { %364 = sbr.rel (%p361_p3) target bundleno = 1488 (0x5d0), region = 60 }
   0xc   : > { %s2081_s13 = smov (!%p419_p4, %s1527_s13), 1  ;;  %vm471_vm0 = vcmask 1042432   ;;  %vm458_vm1 = vcmask 23552   ;;  %v539_v20 = vlaneseq  ;;  %vm553_vm2 = vcmask 130048  }
   0xd   : > { %s1417_s17 = sshll.u32 %s2081_s13, 2  ;;  %s1447_s18 = sshll.u32 %s2081_s13, 5 }
   0xe   : > { %s431_s21 = scalar_lea.vmem %s2042_s1, %s1417_s17  ;;  %s426_s24 = scalar_lea.vmem %s2041_s0, %s1447_s18  ;;  %v1638_v27 = vand.u32 127, %v539_v20 }
   0xf   : > { %v454_v0 = vld [vmem:[%s431_s21] sm:$0x7]  ;;  %v452_v2 = vld [vmem:[%s426_s24 + $0x10] sm:$0xff]  ;;  %s434_s27 = scalar_lea.vmem %s2043_s2, %s2081_s13  ;;  %v453_v3 = vld [vmem:[%s426_s24 + $0x18] sm:$0xff]  ;;  %s1448_s28 = sshll.u32 %s2081_s13, 4 }
  0x10   : > { %v450_v1 = vld [vmem:[%s426_s24] sm:$0xff]  ;;  %1422 = vmatpush.msk.msra.mxu0 %vm471_vm0, %v454_v0  ;;  %1451 = vmatpush.msk.msra.mxu2 %vm471_vm0, %v454_v0  ;;  %v506_v4 = vmul.f32 %v452_v2, %v452_v2  ;;  %v451_v6 = vld [vmem:[%s426_s24 + $0x8] sm:$0xff]  ;;  %v507_v9 = vmul.f32 %v453_v3, %v453_v3  ;;  %s439_s11 = scalar_lea.vmem %s2044_s3, %s1448_s28  ;;  %s448_s24 = scalar_lea.vmem %s2051_s10, %s1447_s18 }
  0x11   : > { %v504_v5 = vmul.f32 %v450_v1, %v450_v1  ;;  %1452 = vmatpush.msk.msra.mxu3 %vm471_vm0, %v454_v0  ;;  %1423 = vmatmul.msk.f32.vlgmr.msra.gmra.mxu0 %vm458_vm1, %v450_v1  ;;  %v505_v10 = vmul.f32 %v451_v6, %v451_v6  ;;  %v1477_v15 = vld [vmem:[%s434_s27] ss:$0 sm:$0xff] }
  0x12   : > { %1425 = vmatmul.msk.f32.vlgmr.msra.gmra.mxu2 %vm458_vm1, %v452_v2  ;;  %1426 = vmatmul.msk.f32.vlgmr.msra.gmra.mxu3 %vm458_vm1, %v453_v3  ;;  %v514_v7 = vsel %vm458_vm1, %v506_v4, 0.0  ;;  %v517_v11 = vsel %vm458_vm1, %v507_v9, 0.0 }
  0x13   : > { %v508_v8 = vsel %vm458_vm1, %v504_v5, 0.0  ;;  %1450 = vmatpush.msk.msra.mxu1 %vm471_vm0, %v454_v0  ;;  %515 = vadd.xlane.f32.xlu1 %v514_v7  ;;  %v511_v12 = vsel %vm458_vm1, %v505_v10, 0.0 }
  0x14   : > { %1424 = vmatmul.msk.f32.vlgmr.msra.gmra.mxu1 %vm458_vm1, %v451_v6  ;;  %509 = vadd.xlane.f32.xlu0 %v508_v8 }
  0x1b   : > { %518 = vadd.xlane.f32.xlu1 %v517_v11 }
  0x1c   : > { %512 = vadd.xlane.f32.xlu0 %v511_v12 }
  0x86   : > { %v516_v13 = vpop.xlane.xlu1 %515 }
  0x87   : > { %v510_v14 = vpop.xlane.xlu0 %509  ;;  %v525_v28 = vadd.f32 %v1477_v15, %v516_v13 }
  0x88   : > { %v523_v16 = vadd.f32 %v1477_v15, %v510_v14 }
  0x8e   : > { %v492_v17 = vpop.f32.mrf.mxu0  ;;  %v519_v23 = vpop.xlane.xlu1 %518 }
  0x8f   : > { %v527_v18 = vmul.f32 2.0, %v492_v17  ;;  %v513_v19 = vpop.xlane.xlu0 %512  ;;  %v526_v29 = vadd.f32 %v1477_v15, %v519_v23 }
  0x90   : > { %v524_v21 = vadd.f32 %v1477_v15, %v513_v19 }
  0x91   : > { %v531_v22 = vsub.f32 %v523_v16, %v527_v18  ;;  %v495_v24 = vpop.f32.mrf.mxu1 }
  0x92   : > { %v528_v25 = vmul.f32 2.0, %v495_v24 }
  0x93   : > { %v535_v26 = vmax.f32 %v531_v22, 0.0 }
  0x94   : > { %v532_v30 = vsub.f32 %v524_v21, %v528_v25 }
  0x95   : > { %v545_v31 = vand.u32 4294967280, %v535_v26  ;;  %v501_v32 = vpop.f32.mrf.mxu3  ;;  %v498_v33 = vpop.f32.mrf.mxu2 }
  0x96   : > { %v530_v34 = vmul.f32 2.0, %v501_v32  ;;  %v529_v35 = vmul.f32 2.0, %v498_v33  ;;  %v536_v36 = vmax.f32 %v532_v30, 0.0 }
  0x97   : > { %v1641_v37 = vor.u32 %v545_v31, %v1638_v27 }
  0x98   : > { %v534_v38 = vsub.f32 %v526_v29, %v530_v34  ;;  %v533_v39 = vsub.f32 %v525_v28, %v529_v35  ;;  %v546_v40 = vand.u32 4294967280, %v536_v36 }
  0x99   : > { %v554_v41 = vsel %vm553_vm2, %v1641_v37, 2147483647 }
  0x9a   : > { %v538_v42 = vmax.f32 %v534_v38, 0.0  ;;  %v537_v43 = vmax.f32 %v533_v39, 0.0  ;;  %v556_v44 = vshra.s32 %v554_v41, 16  ;;  %v1646_v45 = vor.u32 %v546_v40, %v1638_v27 }
  0x9b   : > { %v555_v60 = vand.u32 65535, %v554_v41 }
  0x9c   : > { %v548_v46 = vand.u32 4294967280, %v538_v42  ;;  %v547_v47 = vand.u32 4294967280, %v537_v43  ;;  %v558_v48 = vcvt.s32.f32 %v556_v44  ;;  %v569_v49 = vsel %vm553_vm2, %v1646_v45, 2147483647 }
  0x9d   : > { %v571_v52 = vshra.s32 %v569_v49, 16  ;;  %v557_v62 = vcvt.s32.f32 %v555_v60  ;;  %v570_v1 = vand.u32 65535, %v569_v49 }
  0x9e   : > { %559 = vmin.xlane.f32.xlu2 %v558_v48  ;;  %v1651_v50 = vor.u32 %v548_v46, %v1638_v27  ;;  %v1654_v51 = vor.u32 %v547_v47, %v1638_v27 }
  0x9f   : > { %v573_v57 = vcvt.s32.f32 %v571_v52  ;;  %v572_v7 = vcvt.s32.f32 %v570_v1 }
  0xa0   : > { %v599_v53 = vsel %vm553_vm2, %v1651_v50, 2147483647  ;;  %v584_v54 = vsel %vm553_vm2, %v1654_v51, 2147483647 }
  0xa1   : > { %v601_v55 = vshra.s32 %v599_v53, 16  ;;  %v586_v56 = vshra.s32 %v584_v54, 16  ;;  %v585_v0 = vand.u32 65535, %v584_v54  ;;  %v600_v2 = vand.u32 65535, %v599_v53 }
  0xa3   : > { %v603_v58 = vcvt.s32.f32 %v601_v55  ;;  %v588_v59 = vcvt.s32.f32 %v586_v56  ;;  %v587_v5 = vcvt.s32.f32 %v585_v0  ;;  %v602_v8 = vcvt.s32.f32 %v600_v2 }
  0xa5   : > { %604 = vmin.xlane.f32.xlu1 %v603_v58  ;;  %589 = vmin.xlane.f32.xlu0 %v588_v59 }
  0xa6   : > { %574 = vmin.xlane.f32.xlu2 %v573_v57 }
 0x111   : > { %v560_v61 = vpop.xlane.xlu2 %559 }
 0x112   : > { %vm561_vm3 = vcmp.eq.f32.partialorder %v558_v48, %v560_v61  ;;  %v566_v12 = vcvt.f32.s32 %v560_v61 }
 0x113   : > { %v562_v63 = vsel %vm561_vm3, %v557_v62, inf }
 0x114   : > { %563 = vmin.xlane.f32.xlu2 %v562_v63  ;;  %v567_v14 = vshll.u32 %v566_v12, 16 }
 0x118   : > { %v605_v3 = vpop.xlane.xlu1 %604  ;;  %v590_v4 = vpop.xlane.xlu0 %589 }
 0x119   : > { %v575_v6 = vpop.xlane.xlu2 %574  ;;  %vm591_vm4 = vcmp.eq.f32.partialorder %v588_v59, %v590_v4  ;;  %vm606_vm5 = vcmp.eq.f32.partialorder %v603_v58, %v605_v3  ;;  %v611_v17 = vcvt.f32.s32 %v605_v3  ;;  %v596_v18 = vcvt.f32.s32 %v590_v4 }
 0x11a   : > { %v592_v9 = vsel %vm591_vm4, %v587_v5, inf  ;;  %vm576_vm6 = vcmp.eq.f32.partialorder %v573_v57, %v575_v6  ;;  %v607_v11 = vsel %vm606_vm5, %v602_v8, inf  ;;  %v581_v19 = vcvt.f32.s32 %v575_v6 }
 0x11b   : > { %593 = vmin.xlane.f32.xlu1 %v592_v9  ;;  %v577_v10 = vsel %vm576_vm6, %v572_v7, inf  ;;  %v612_v25 = vshll.u32 %v611_v17, 16  ;;  %v597_v26 = vshll.u32 %v596_v18, 16 }
 0x11c   : > { %578 = vmin.xlane.f32.xlu0 %v577_v10  ;;  %608 = vmin.xlane.f32.xlu2 %v607_v11  ;;  %v582_v32 = vshll.u32 %v581_v19, 16 }
 0x187   : > { %v564_v13 = vpop.xlane.xlu2 %563 }
 0x188   : > { %v565_v15 = vcvt.f32.s32 %v564_v13 }
 0x18a   : > { %v568_v16 = vadd.s32 %v567_v14, %v565_v15 }
 0x18c   : > { %v614_v20 = vand.u32 15, %v568_v16  ;;  %v618_v21 = vand.u32 4294967280, %v568_v16 }
 0x18e   : > { %v630_v22 = vadd.f32 1e-08, %v618_v21  ;;  %v594_v23 = vpop.xlane.xlu1 %593  ;;  %vm1661_vm7 = vcmp.eq.s32.totalorder %v1638_v27, %v614_v20 }
 0x18f   : > { %v595_v28 = vcvt.f32.s32 %v594_v23  ;;  %v579_v29 = vpop.xlane.xlu0 %578  ;;  %v609_v30 = vpop.xlane.xlu2 %608  ;;  %v1668_v31 = vsel %vm1661_vm7, 2139095039, %v1641_v37 }
 0x190   : > { %1481 = vrcp.f32 %v630_v22  ;;  %v580_v33 = vcvt.f32.s32 %v579_v29  ;;  %v610_v34 = vcvt.f32.s32 %v609_v30  ;;  %v1672_v36 = vsel %vm553_vm2, %v1668_v31, 2147483647 }
 0x191   : > { %v598_v35 = vadd.s32 %v597_v26, %v595_v28  ;;  %v712_v40 = vshra.s32 %v1672_v36, 16  ;;  %v643_v56 = vand.u32 2147483647, %v630_v22  ;;  %v645_v60 = vand.u32 2147483648, %v630_v22 }
 0x192   : > { %v583_v38 = vadd.s32 %v582_v32, %v580_v33  ;;  %v613_v39 = vadd.s32 %v612_v25, %v610_v34  ;;  %vm639_vm11 = vweird.f32 %v630_v22 }
 0x193   : > { %v616_v41 = vand.u32 15, %v598_v35  ;;  %v620_v42 = vand.u32 4294967280, %v598_v35  ;;  %v1677_v47 = vcvt.s32.f32 %v712_v40  ;;  %vm1723_vm13 = vcmp.eq.f32.partialorder %v643_v56, 8.507059e+37 }
 0x194   : > { %v615_v43 = vand.u32 15, %v583_v38  ;;  %v619_v44 = vand.u32 4294967280, %v583_v38  ;;  %v621_v46 = vand.u32 4294967280, %v613_v39  ;;  %v617_v57 = vand.u32 15, %v613_v39 }
 0x195   : > { %v1675_v37 = vadd.f32 1e-08, %v620_v42  ;;  %vm1680_vm8 = vcmp.eq.s32.totalorder %v1638_v27, %v616_v41  ;;  %715 = vmin.xlane.f32.xlu0 %v1677_v47  ;;  %v646_v6 = vor.u32 1.1754944e-38, %v645_v60  ;;  %v711_v56 = vand.u32 65535, %v1672_v36 }
 0x196   : > { %v1482_v49 = vpop.eup %1481  ;;  %v1684_v52 = vadd.f32 1e-08, %v619_v44  ;;  %v1686_v53 = vadd.f32 1e-08, %v621_v46  ;;  %v1691_v54 = vsel %vm1680_vm8, 2139095039, %v1654_v51  ;;  %vm1701_vm9 = vcmp.eq.s32.totalorder %v1638_v27, %v615_v43 }
 0x197   : > { %v635_v55 = vmul.f32 %v1482_v49, %v630_v22  ;;  %1483 = vrcp.f32 %v1675_v37  ;;  %v1698_v58 = vsel %vm553_vm2, %v1691_v54, 2147483647  ;;  %vm640_vm10 = vweird.f32 %v1482_v49 }
 0x198   : > { %1485 = vrcp.f32 %v1684_v52  ;;  %v742_v61 = vshra.s32 %v1698_v58, 16  ;;  %v1712_v0 = vsel %vm1701_vm9, 2139095039, %v1646_v45  ;;  %vm1719_vm12 = vcmp.eq.s32.totalorder %v1638_v27, %v617_v57  ;;  %vm641_vm14 = vmor %vm639_vm11, %vm640_vm10 }
 0x199   : > { %1487 = vrcp.f32 %v1686_v53  ;;  %v636_v51 = vsub.f32 1.0, %v635_v55  ;;  %v1716_v1 = vsel %vm553_vm2, %v1712_v0, 2147483647  ;;  %vm669_vm15 = vweird.f32 %v1675_v37 }
 0x19a   : > { %v1707_v63 = vcvt.s32.f32 %v742_v61  ;;  %v727_v45 = vshra.s32 %v1716_v1, 16  ;;  %v673_v9 = vand.u32 2147483647, %v1675_v37  ;;  %v675_v10 = vand.u32 2147483648, %v1675_v37 }
 0x19b   : > { %v637_v62 = vmul.f32 %v1482_v49, %v636_v51  ;;  %v1739_v15 = vsel %vm1719_vm12, 2139095039, %v1651_v50  ;;  %vm654_vm0 = vweird.f32 %v1684_v52  ;;  %v658_v21 = vand.u32 2147483647, %v1684_v52 }
 0x19c   : > { %745 = vmin.xlane.f32.xlu2 %v1707_v63  ;;  %v1734_v14 = vcvt.s32.f32 %v727_v45  ;;  %v660_v22 = vand.u32 2147483648, %v1684_v52  ;;  %v755_v25 = vsel %vm553_vm2, %v1739_v15, 2147483647  ;;  %v690_v28 = vand.u32 2147483648, %v1686_v53 }
 0x19d   : > { %v1484_v3 = vpop.eup %1483  ;;  %v638_v4 = vadd.f32 %v1482_v49, %v637_v62  ;;  %v757_v29 = vshra.s32 %v755_v25, 16  ;;  %v688_v33 = vand.u32 2147483647, %v1686_v53  ;;  %vm674_vm6 = vcmp.eq.f32.partialorder %v673_v9, 8.507059e+37 }
 0x19e   : > { %v1486_v7 = vpop.eup %1485  ;;  %v665_v8 = vmul.f32 %v1484_v3, %v1675_v37  ;;  %730 = vmin.xlane.f32.xlu1 %v1734_v14  ;;  %vm670_vm1 = vweird.f32 %v1484_v3  ;;  %v676_v34 = vor.u32 1.1754944e-38, %v675_v10  ;;  %v661_v40 = vor.u32 1.1754944e-38, %v660_v22 }
 0x19f   : > { %v1488_v11 = vpop.eup %1487  ;;  %v650_v12 = vmul.f32 %v1486_v7, %v1684_v52  ;;  %v642_v13 = vsel %vm641_vm14, %v1482_v49, %v638_v4  ;;  %vm655_vm3 = vweird.f32 %v1486_v7  ;;  %vm671_vm5 = vmor %vm669_vm15, %vm670_vm1  ;;  %v759_v38 = vcvt.s32.f32 %v757_v29 }
 0x1a0   : > { %v680_v16 = vmul.f32 %v1488_v11, %v1686_v53  ;;  %v1744_v17 = vsel %vm1723_vm13, %v646_v6, %v642_v13  ;;  %v666_v18 = vsub.f32 1.0, %v665_v8  ;;  %vm685_vm4 = vweird.f32 %v1488_v11  ;;  %vm656_vm10 = vmor %vm654_vm0, %vm655_vm3 }
 0x1a1   : > { %v694_v19 = vsel %vm1661_vm7, %v1744_v17, 0.0  ;;  %v651_v20 = vsub.f32 1.0, %v650_v12  ;;  %vm684_vm11 = vweird.f32 %v1686_v53  ;;  %vm659_vm13 = vcmp.eq.f32.partialorder %v658_v21, 8.507059e+37  ;;  %760 = vmin.xlane.f32.xlu0 %v759_v38 }
 0x1a2   : > { %v667_v50 = vmul.f32 %v1484_v3, %v666_v18  ;;  %v681_v23 = vsub.f32 1.0, %v680_v16  ;;  %vm686_vm14 = vmor %vm684_vm11, %vm685_vm4  ;;  %v691_v44 = vor.u32 1.1754944e-38, %v690_v28  ;;  %vm689_vm15 = vcmp.eq.f32.partialorder %v688_v33, 8.507059e+37 }
 0x1a3   : > { %v652_v26 = vmul.f32 %v1486_v7, %v651_v20  ;;  %v713_v51 = vcvt.s32.f32 %v711_v56  ;;  %v741_v61 = vand.u32 65535, %v1698_v58  ;;  %v726_v4 = vand.u32 65535, %v1716_v1 }
 0x1a4   : > { %v668_v30 = vadd.f32 %v1484_v3, %v667_v50  ;;  %v682_v32 = vmul.f32 %v1488_v11, %v681_v23 }
 0x1a5   : > { %v653_v35 = vadd.f32 %v1486_v7, %v652_v26  ;;  %v728_v45 = vcvt.s32.f32 %v726_v4 }
 0x1a6   : > { %v672_v39 = vsel %vm671_vm5, %v1484_v3, %v668_v30  ;;  %v683_v41 = vadd.f32 %v1488_v11, %v682_v32  ;;  %v743_v3 = vcvt.s32.f32 %v741_v61 }
 0x1a7   : > { %v1762_v42 = vsel %vm674_vm6, %v676_v34, %v672_v39  ;;  %v657_v43 = vsel %vm656_vm10, %v1486_v7, %v653_v35  ;;  %v756_v7 = vand.u32 65535, %v755_v25 }
 0x1a8   : > { %v696_v46 = vsel %vm1680_vm8, %v1762_v42, 0.0  ;;  %v1768_v37 = vsel %vm659_vm13, %v661_v40, %v657_v43  ;;  %v687_v49 = vsel %vm686_vm14, %v1488_v11, %v683_v41 }
 0x1a9   : > { %v695_v52 = vsel %vm1701_vm9, %v1768_v37, 0.0  ;;  %v1773_v53 = vsel %vm689_vm15, %v691_v44, %v687_v49  ;;  %v758_v8 = vcvt.s32.f32 %v756_v7 }
 0x1aa   : > { %v697_v55 = vsel %vm1719_vm12, %v1773_v53, 0.0 }
 0x208   : > { %v716_v57 = vpop.xlane.xlu0 %715 }
 0x209   : > { %vm717_vm0 = vcmp.eq.f32.partialorder %v1677_v47, %v716_v57  ;;  %v722_v9 = vcvt.f32.s32 %v716_v57 }
 0x20a   : > { %v718_v60 = vsel %vm717_vm0, %v713_v51, inf }
 0x20b   : > { %719 = vmin.xlane.f32.xlu1 %v718_v60  ;;  %v723_v11 = vshll.u32 %v722_v9, 16 }
 0x20f   : > { %v746_v62 = vpop.xlane.xlu2 %745 }
 0x210   : > { %vm747_vm1 = vcmp.eq.f32.partialorder %v1707_v63, %v746_v62  ;;  %v752_v12 = vcvt.f32.s32 %v746_v62 }
 0x211   : > { %v748_v5 = vsel %vm747_vm1, %v743_v3, inf  ;;  %v731_v6 = vpop.xlane.xlu1 %730 }
 0x212   : > { %749 = vmin.xlane.f32.xlu0 %v748_v5  ;;  %vm732_vm3 = vcmp.eq.f32.partialorder %v1734_v14, %v731_v6  ;;  %v753_v18 = vshll.u32 %v752_v12, 16  ;;  %v737_v21 = vcvt.f32.s32 %v731_v6 }
 0x213   : > { %v733_v36 = vsel %vm732_vm3, %v728_v45, inf }
 0x214   : > { %734 = vmin.xlane.f32.xlu2 %v733_v36  ;;  %v761_v47 = vpop.xlane.xlu0 %760  ;;  %v738_v29 = vshll.u32 %v737_v21, 16 }
 0x215   : > { %vm762_vm4 = vcmp.eq.f32.partialorder %v759_v38, %v761_v47  ;;  %v767_v34 = vcvt.f32.s32 %v761_v47 }
 0x216   : > { %v763_v58 = vsel %vm762_vm4, %v758_v8, inf }
 0x217   : > { %764 = vmin.xlane.f32.xlu1 %v763_v58  ;;  %v768_v56 = vshll.u32 %v767_v34, 16 }
 0x27e   : > { %v720_v10 = vpop.xlane.xlu1 %719 }
 0x27f   : > { %v721_v1 = vcvt.f32.s32 %v720_v10 }
 0x281   : > { %v724_v63 = vadd.s32 %v723_v11, %v721_v1 }
 0x283   : > { %v770_v13 = vand.u32 15, %v724_v63  ;;  %v774_v16 = vand.u32 4294967280, %v724_v63 }
 0x285   : > { %v750_v20 = vpop.xlane.xlu0 %749  ;;  %v786_v14 = vadd.f32 1e-08, %v774_v16  ;;  %vm1785_vm5 = vcmp.eq.s32.totalorder %v1638_v27, %v770_v13 }
 0x286   : > { %v751_v22 = vcvt.f32.s32 %v750_v20  ;;  %v862_v23 = vsel %vm1785_vm5, 2139095039, %v1668_v31 }
 0x287   : > { %1489 = vrcp.f32 %v786_v14  ;;  %v735_v26 = vpop.xlane.xlu2 %734  ;;  %v1793_v28 = vsel %vm553_vm2, %v862_v23, 2147483647  ;;  %v799_v4 = vand.u32 2147483647, %v786_v14  ;;  %v801_v45 = vand.u32 2147483648, %v786_v14 }
 0x288   : > { %v754_v25 = vadd.s32 %v753_v18, %v751_v22  ;;  %v736_v33 = vcvt.f32.s32 %v735_v26  ;;  %v868_v35 = vshra.s32 %v1793_v28, 16  ;;  %vm795_vm13 = vweird.f32 %v786_v14 }
 0x289   : > { %vm800_vm14 = vcmp.eq.f32.partialorder %v799_v4, 8.507059e+37  ;;  %v802_v63 = vor.u32 1.1754944e-38, %v801_v45 }
 0x28a   : > { %v772_v30 = vand.u32 15, %v754_v25  ;;  %v776_v32 = vand.u32 4294967280, %v754_v25  ;;  %v739_v39 = vadd.s32 %v738_v29, %v736_v33  ;;  %v1801_v31 = vcvt.s32.f32 %v868_v35  ;;  %v765_v51 = vpop.xlane.xlu1 %764 }
 0x28b   : > { %v766_v60 = vcvt.f32.s32 %v765_v51 }
 0x28c   : > { %v788_v38 = vadd.f32 1e-08, %v776_v32  ;;  %vm1797_vm6 = vcmp.eq.s32.totalorder %v1638_v27, %v772_v30  ;;  %v771_v44 = vand.u32 15, %v739_v39  ;;  %v775_v49 = vand.u32 4294967280, %v739_v39  ;;  %871 = vmin.xlane.f32.xlu2 %v1801_v31 }
 0x28d   : > { %v864_v41 = vsel %vm1797_vm6, 2139095039, %v1691_v54  ;;  %v1490_v43 = vpop.eup %1489  ;;  %v769_v6 = vadd.s32 %v768_v56, %v766_v60 }
 0x28e   : > { %1491 = vrcp.f32 %v788_v38  ;;  %v791_v57 = vmul.f32 %v1490_v43, %v786_v14  ;;  %v1807_v61 = vadd.f32 1e-08, %v775_v49  ;;  %v1810_v62 = vsel %vm553_vm2, %v864_v41, 2147483647 }
 0x28f   : > { %vm1813_vm10 = vcmp.eq.s32.totalorder %v1638_v27, %v771_v44  ;;  %v898_v5 = vshra.s32 %v1810_v62, 16  ;;  %vm796_vm11 = vweird.f32 %v1490_v43  ;;  %v773_v58 = vand.u32 15, %v769_v6 }
 0x290   : > { %v792_v54 = vsub.f32 1.0, %v791_v57  ;;  %1493 = vrcp.f32 %v1807_v61  ;;  %v863_v47 = vsel %vm1813_vm10, 2139095039, %v1712_v0  ;;  %v777_v9 = vand.u32 4294967280, %v769_v6  ;;  %vm797_vm15 = vmor %vm795_vm13, %vm796_vm11 }
 0x291   : > { %v1819_v7 = vcvt.s32.f32 %v898_v5  ;;  %v1826_v1 = vsel %vm553_vm2, %v863_v47, 2147483647  ;;  %v829_v13 = vand.u32 2147483647, %v788_v38  ;;  %vm1831_vm0 = vcmp.eq.s32.totalorder %v1638_v27, %v773_v58 }
 0x292   : > { %v793_v36 = vmul.f32 %v1490_v43, %v792_v54  ;;  %v1828_v12 = vadd.f32 1e-08, %v777_v9  ;;  %v831_v20 = vand.u32 2147483648, %v788_v38  ;;  %v865_v21 = vsel %vm1831_vm0, 2139095039, %v1739_v15 }
 0x293   : > { %901 = vmin.xlane.f32.xlu1 %v1819_v7  ;;  %v883_v23 = vshra.s32 %v1826_v1, 16  ;;  %v1853_v32 = vsel %vm553_vm2, %v865_v21, 2147483647  ;;  %vm825_vm3 = vweird.f32 %v788_v38  ;;  %vm830_vm11 = vcmp.eq.f32.partialorder %v829_v13, 8.507059e+37 }
 0x294   : > { %v1492_v8 = vpop.eup %1491  ;;  %v794_v11 = vadd.f32 %v1490_v43, %v793_v36  ;;  %1495 = vrcp.f32 %v1828_v12  ;;  %v913_v34 = vshra.s32 %v1853_v32, 16  ;;  %v832_v39 = vor.u32 1.1754944e-38, %v831_v20 }
 0x295   : > { %v821_v10 = vmul.f32 %v1492_v8, %v788_v38  ;;  %vm826_vm1 = vweird.f32 %v1492_v8  ;;  %v885_v50 = vcvt.s32.f32 %v883_v23  ;;  %v816_v24 = vand.u32 2147483648, %v1807_v61 }
 0x296   : > { %v798_v16 = vsel %vm797_vm15, %v1490_v43, %v794_v11  ;;  %v1494_v14 = vpop.eup %1493  ;;  %vm827_vm4 = vmor %vm825_vm3, %vm826_vm1  ;;  %v915_v43 = vcvt.s32.f32 %v913_v34  ;;  %v814_v49 = vand.u32 2147483647, %v1807_v61  ;;  %v846_v5 = vand.u32 2147483648, %v1828_v12 }
 0x297   : > { %v822_v18 = vsub.f32 1.0, %v821_v10  ;;  %v803_v22 = vsel %vm800_vm14, %v802_v63, %v798_v16  ;;  %v806_v25 = vmul.f32 %v1494_v14, %v1807_v61  ;;  %vm811_vm7 = vweird.f32 %v1494_v14  ;;  %886 = vmin.xlane.f32.xlu0 %v885_v50 }
 0x298   : > { %v1842_v26 = vadd.f32 %v803_v22, %v1744_v17  ;;  %v850_v29 = vsel %vm1785_vm5, %v803_v22, 0.0  ;;  %916 = vmin.xlane.f32.xlu2 %v915_v43  ;;  %vm810_vm5 = vweird.f32 %v1807_v61  ;;  %v817_v4 = vor.u32 1.1754944e-38, %v816_v24 }
 0x299   : > { %v823_v30 = vmul.f32 %v1492_v8, %v822_v18  ;;  %v1850_v15 = vadd.f32 %v850_v29, %v694_v19  ;;  %v807_v35 = vsub.f32 1.0, %v806_v25  ;;  %vm812_vm13 = vmor %vm810_vm5, %vm811_vm7  ;;  %vm815_vm14 = vcmp.eq.f32.partialorder %v814_v49, 8.507059e+37 }
 0x29a   : > { %v1496_v17 = vpop.eup %1495  ;;  %v844_v40 = vand.u32 2147483647, %v1828_v12  ;;  %vm840_vm8 = vweird.f32 %v1828_v12  ;;  %v847_v47 = vor.u32 1.1754944e-38, %v846_v5  ;;  %v882_v2 = vand.u32 65535, %v1826_v1 }
 0x29b   : > { %v824_v33 = vadd.f32 %v1492_v8, %v823_v30  ;;  %v808_v44 = vmul.f32 %v1494_v14, %v807_v35  ;;  %v836_v38 = vmul.f32 %v1496_v17, %v1828_v12  ;;  %vm841_vm15 = vweird.f32 %v1496_v17 }
 0x29c   : > { %vm845_vm1 = vcmp.eq.f32.partialorder %v844_v40, 8.507059e+37  ;;  %v897_v12 = vand.u32 65535, %v1810_v62 }
 0x29d   : > { %v828_v41 = vsel %vm827_vm4, %v1492_v8, %v824_v33  ;;  %v809_v60 = vadd.f32 %v1494_v14, %v808_v44  ;;  %v837_v54 = vsub.f32 1.0, %v836_v38 }
 0x29e   : > { %v833_v19 = vsel %vm830_vm11, %v832_v39, %v828_v41  ;;  %v899_v13 = vcvt.s32.f32 %v897_v12  ;;  %v457_v41 = vld [vmem:[%s439_s11 + $0x8] sm:$0xff] }
 0x29f   : > { %v1860_v56 = vadd.f32 %v833_v19, %v1762_v42  ;;  %v852_v57 = vsel %vm1797_vm6, %v833_v19, 0.0  ;;  %v813_v6 = vsel %vm812_vm13, %v1494_v14, %v809_v60  ;;  %v838_v45 = vmul.f32 %v1496_v17, %v837_v54  ;;  %vm842_vm6 = vmor %vm840_vm8, %vm841_vm15  ;;  %1108 = vmatpush.msrb.mxu1 %v457_v41 }
 0x2a0   : > { %v1868_v51 = vadd.f32 %v852_v57, %v696_v46  ;;  %v818_v36 = vsel %vm815_vm14, %v817_v4, %v813_v6 }
 0x2a1   : > { %v1874_v48 = vadd.f32 %v818_v36, %v1768_v37  ;;  %v851_v42 = vsel %vm1813_vm10, %v818_v36, 0.0  ;;  %v839_v46 = vadd.f32 %v1496_v17, %v838_v45  ;;  %v867_v37 = vand.u32 65535, %v1793_v28 }
 0x2a2   : > { %v1883_v61 = vadd.f32 %v851_v42, %v695_v52  ;;  %v884_v28 = vcvt.s32.f32 %v882_v2 }
 0x2a3   : > { %v843_v8 = vsel %vm842_vm6, %v1496_v17, %v839_v46  ;;  %v869_v10 = vcvt.s32.f32 %v867_v37 }
 0x2a4   : > { %v848_v58 = vsel %vm845_vm1, %v847_v47, %v843_v8 }
 0x2a5   : > { %v1886_v9 = vadd.f32 %v848_v58, %v1773_v53  ;;  %v853_v3 = vsel %vm1831_vm0, %v848_v58, 0.0  ;;  %v912_v53 = vand.u32 65535, %v1853_v32 }
 0x2a6   : > { %v1894_v59 = vadd.f32 %v853_v3, %v697_v55 }
 0x2a7   : > { %v914_v18 = vcvt.s32.f32 %v912_v53 }
 0x2ff   : > { %v872_v52 = vpop.xlane.xlu2 %871 }
 0x300   : > { %vm873_vm9 = vcmp.eq.f32.partialorder %v1801_v31, %v872_v52  ;;  %v878_v20 = vcvt.f32.s32 %v872_v52 }
 0x301   : > { %v874_v11 = vsel %vm873_vm9, %v869_v10, inf }
 0x302   : > { %875 = vmin.xlane.f32.xlu0 %v874_v11 }
 0x306   : > { %v902_v63 = vpop.xlane.xlu1 %901 }
 0x307   : > { %vm903_vm10 = vcmp.eq.f32.partialorder %v1819_v7, %v902_v63  ;;  %v879_v7 = vshll.u32 %v878_v20, 16  ;;  %v908_v23 = vcvt.f32.s32 %v902_v63 }
 0x308   : > { %v904_v0 = vsel %vm903_vm10, %v899_v13, inf }
 0x309   : > { %905 = vmin.xlane.f32.xlu2 %v904_v0  ;;  %v909_v32 = vshll.u32 %v908_v23, 16 }
 0x30a   : > { %v887_v55 = vpop.xlane.xlu0 %886 }
 0x30b   : > { %v917_v16 = vpop.xlane.xlu2 %916  ;;  %vm888_vm12 = vcmp.eq.f32.partialorder %v885_v50, %v887_v55  ;;  %v893_v35 = vcvt.f32.s32 %v887_v55 }
 0x30c   : > { %v889_v31 = vsel %vm888_vm12, %v884_v28, inf  ;;  %vm918_vm0 = vcmp.eq.f32.partialorder %v915_v43, %v917_v16  ;;  %v923_v39 = vcvt.f32.s32 %v917_v16  ;;  %v456_v43 = vld [vmem:[%s439_s11] sm:$0xff] }
 0x30d   : > { %890 = vmin.xlane.f32.xlu1 %v889_v31  ;;  %v919_v62 = vsel %vm918_vm0, %v914_v18, inf  ;;  %v894_v49 = vshll.u32 %v893_v35, 16  ;;  %1109 = vmatpush.msrb.mxu1 %v456_v43 }
 0x30e   : > { %920 = vmin.xlane.f32.xlu0 %v919_v62  ;;  %v924_v38 = vshll.u32 %v923_v39, 16 }
 0x375   : > { %v876_v21 = vpop.xlane.xlu0 %875 }
 0x376   : > { %v877_v14 = vcvt.f32.s32 %v876_v21 }
 0x378   : > { %v880_v22 = vadd.s32 %v879_v7, %v877_v14 }
 0x37a   : > { %v930_v1 = vand.u32 4294967280, %v880_v22  ;;  %v926_v36 = vand.u32 15, %v880_v22 }
 0x37c   : > { %v906_v25 = vpop.xlane.xlu2 %905  ;;  %v942_v29 = vadd.f32 1e-08, %v930_v1  ;;  %vm938_vm5 = vcmp.eq.s32.totalorder %v1638_v27, %v926_v36 }
 0x37d   : > { %v907_v30 = vcvt.f32.s32 %v906_v25 }
 0x37e   : > { %1497 = vrcp.f32 %v942_v29  ;;  %v957_v4 = vand.u32 2147483648, %v942_v29  ;;  %v955_v40 = vand.u32 2147483647, %v942_v29  ;;  %vm951_vm4 = vweird.f32 %v942_v29 }
 0x37f   : > { %v1903_v33 = vadd.s32 %v909_v32, %v907_v30 }
 0x380   : > { %v891_v24 = vpop.xlane.xlu1 %890  ;;  %v958_v58 = vor.u32 1.1754944e-38, %v957_v4  ;;  %vm956_vm7 = vcmp.eq.f32.partialorder %v955_v40, 8.507059e+37 }
 0x381   : > { %v932_v34 = vand.u32 4294967280, %v1903_v33  ;;  %v921_v19 = vpop.xlane.xlu0 %920  ;;  %v892_v57 = vcvt.f32.s32 %v891_v24 }
 0x382   : > { %v922_v60 = vcvt.f32.s32 %v921_v19 }
 0x383   : > { %v944_v50 = vadd.f32 1e-08, %v932_v34  ;;  %v1909_v5 = vadd.s32 %v894_v49, %v892_v57 }
 0x384   : > { %v1498_v44 = vpop.eup %1497  ;;  %v1911_v6 = vadd.s32 %v924_v38, %v922_v60 }
 0x385   : > { %v947_v17 = vmul.f32 %v1498_v44, %v942_v29  ;;  %1499 = vrcp.f32 %v944_v50  ;;  %vm952_vm3 = vweird.f32 %v1498_v44  ;;  %v931_v42 = vand.u32 4294967280, %v1909_v5 }
 0x386   : > { %v933_v46 = vand.u32 4294967280, %v1911_v6  ;;  %vm953_vm11 = vmor %vm951_vm4, %vm952_vm3  ;;  %v985_v0 = vand.u32 2147483647, %v944_v50  ;;  %v987_v2 = vand.u32 2147483648, %v944_v50  ;;  %vm981_vm14 = vweird.f32 %v944_v50 }
 0x387   : > { %v948_v54 = vsub.f32 1.0, %v947_v17  ;;  %v943_v37 = vadd.f32 1e-08, %v931_v42 }
 0x388   : > { %v945_v10 = vadd.f32 1e-08, %v933_v46  ;;  %v988_v16 = vor.u32 1.1754944e-38, %v987_v2  ;;  %vm986_vm8 = vcmp.eq.f32.partialorder %v985_v0, 8.507059e+37  ;;  %v929_v2 = vand.u32 15, %v1911_v6 }
 0x389   : > { %v949_v45 = vmul.f32 %v1498_v44, %v948_v54  ;;  %1501 = vrcp.f32 %v943_v37  ;;  %vm966_vm6 = vweird.f32 %v943_v37  ;;  %v972_v22 = vand.u32 2147483648, %v943_v37 }
 0x38a   : > { %1503 = vrcp.f32 %v945_v10  ;;  %v970_v25 = vand.u32 2147483647, %v943_v37  ;;  %vm996_vm9 = vweird.f32 %v945_v10  ;;  %v1000_v30 = vand.u32 2147483647, %v945_v10 }
 0x38b   : > { %v1500_v47 = vpop.eup %1499  ;;  %v950_v8 = vadd.f32 %v1498_v44, %v949_v45  ;;  %v1002_v32 = vand.u32 2147483648, %v945_v10  ;;  %v928_v45 = vand.u32 15, %v1903_v33 }
 0x38c   : > { %v977_v3 = vmul.f32 %v1500_v47, %v944_v50  ;;  %vm982_vm13 = vweird.f32 %v1500_v47  ;;  %v973_v50 = vor.u32 1.1754944e-38, %v972_v22  ;;  %vm971_vm3 = vcmp.eq.f32.partialorder %v970_v25, 8.507059e+37 }
 0x38d   : > { %v954_v52 = vsel %vm953_vm11, %v1498_v44, %v950_v8  ;;  %vm983_vm15 = vmor %vm981_vm14, %vm982_vm13  ;;  %v1003_v49 = vor.u32 1.1754944e-38, %v1002_v32  ;;  %vm1944_vm14 = vcmp.eq.s32.totalorder %v1638_v27, %v928_v45  ;;  %v1233_v8 = vld [vmem:[%s2049_s8] sm:$0xff] }
 0x38e   : > { %v959_v11 = vsel %vm956_vm7, %v958_v58, %v954_v52  ;;  %v978_v12 = vsub.f32 1.0, %v977_v3  ;;  %vm1001_vm7 = vcmp.eq.f32.partialorder %v1000_v30, 8.507059e+37 }
 0x38f   : > { %v1006_v63 = vsel %vm938_vm5, %v959_v11, 0.0  ;;  %v1014_v13 = vadd.f32 %v959_v11, %v1842_v26  ;;  %v1502_v18 = vpop.eup %1501 }
 0x390   : > { %v1918_v53 = vadd.f32 %v1006_v63, %v1850_v15  ;;  %v979_v55 = vmul.f32 %v1500_v47, %v978_v12  ;;  %v962_v20 = vmul.f32 %v1502_v18, %v943_v37  ;;  %v1504_v26 = vpop.eup %1503  ;;  %vm967_vm1 = vweird.f32 %v1502_v18  ;;  %v1123_v37 = vld [vmem:[%s2045_s4] sm:$0xff] }
 0x391   : > { %1505 = vrcp.f32 %v1014_v13  ;;  %v992_v14 = vmul.f32 %v1504_v26, %v945_v10  ;;  %vm997_vm10 = vweird.f32 %v1504_v26  ;;  %vm968_vm12 = vmor %vm966_vm6, %vm967_vm1  ;;  %v1027_v43 = vand.u32 2147483647, %v1014_v13 }
 0x392   : > { %v980_v28 = vadd.f32 %v1500_v47, %v979_v55  ;;  %v963_v7 = vsub.f32 1.0, %v962_v20  ;;  %vm1023_vm4 = vweird.f32 %v1014_v13  ;;  %vm998_vm11 = vmor %vm996_vm9, %vm997_vm10  ;;  %v927_v10 = vand.u32 15, %v1909_v5 }
 0x393   : > { %v993_v29 = vsub.f32 1.0, %v992_v14  ;;  %vm1028_vm13 = vcmp.eq.f32.partialorder %v1027_v43, 8.507059e+37 }
 0x394   : > { %v984_v31 = vsel %vm983_vm15, %v1500_v47, %v980_v28  ;;  %v964_v1 = vmul.f32 %v1502_v18, %v963_v7  ;;  %vm1967_vm10 = vcmp.eq.s32.totalorder %v1638_v27, %v927_v10 }
 0x395   : > { %v1920_v62 = vsel %vm986_vm8, %v988_v16, %v984_v31  ;;  %v994_v39 = vmul.f32 %v1504_v26, %v993_v29  ;;  %vm1142_vm8 = vcmask 1043456  }
 0x396   : > { %v1924_v21 = vadd.f32 %v1920_v62, %v1860_v56  ;;  %v965_v35 = vadd.f32 %v1502_v18, %v964_v1  ;;  %v1029_v56 = vand.u32 2147483648, %v1014_v13  ;;  %v1008_v52 = vsel %vm1944_vm14, %v1920_v62, 0.0 }
 0x397   : > { %v1506_v15 = vpop.eup %1505  ;;  %v995_v24 = vadd.f32 %v1504_v26, %v994_v39 }
 0x398   : > { %1507 = vrcp.f32 %v1924_v21  ;;  %v1019_v23 = vmul.f32 %v1506_v15, %v1014_v13  ;;  %vm1024_vm0 = vweird.f32 %v1506_v15  ;;  %v969_v44 = vsel %vm968_vm12, %v1502_v18, %v965_v35 }
 0x399   : > { %v1928_v19 = vsel %vm971_vm3, %v973_v50, %v969_v44  ;;  %v999_v60 = vsel %vm998_vm11, %v1504_v26, %v995_v24  ;;  %vm1025_vm5 = vmor %vm1023_vm4, %vm1024_vm0  ;;  %v1030_v54 = vor.u32 1.1754944e-38, %v1029_v56  ;;  %v1059_v33 = vand.u32 2147483648, %v1924_v21  ;;  %v1179_v24 = vld [vmem:[%s2047_s6] sm:$0xff] }
 0x39a   : > { %v1020_v34 = vsub.f32 1.0, %v1019_v23  ;;  %v1933_v57 = vadd.f32 %v1928_v19, %v1874_v48  ;;  %v1937_v40 = vsel %vm1001_vm7, %v1003_v49, %v999_v60  ;;  %v1057_v3 = vand.u32 2147483647, %v1924_v21 }
 0x39b   : > { %v1017_v42 = vadd.f32 %v1937_v40, %v1886_v9  ;;  %v1124_v9 = vld [vmem:[%s2045_s4 + $0x8] sm:$0xf]  ;;  %vm1053_vm6 = vweird.f32 %v1924_v21  ;;  %v1060_v13 = vor.u32 1.1754944e-38, %v1059_v33  ;;  %v1007_v31 = vsel %vm1967_vm10, %v1928_v19, 0.0  ;;  %v1479_v33 = vld [vmem:[%s2048_s7] ss:$0 sm:$0xff] }
 0x39c   : > { %v1021_v41 = vmul.f32 %v1506_v15, %v1020_v34  ;;  %1509 = vrcp.f32 %v1933_v57  ;;  %1431 = vmatpush.msk.msrb.mxu2 %vm1142_vm8, %v1124_v9  ;;  %vm1058_vm9 = vcmp.eq.f32.partialorder %v1057_v3, 8.507059e+37  ;;  %v1044_v62 = vand.u32 2147483648, %v1933_v57 }
 0x39d   : > { %1511 = vrcp.f32 %v1017_v42  ;;  %vm1977_vm0 = vcmp.eq.s32.totalorder %v1638_v27, %v929_v2  ;;  %vm1038_vm3 = vweird.f32 %v1933_v57  ;;  %v1072_v22 = vand.u32 2147483647, %v1017_v42 }
 0x39e   : > { %v1508_v17 = vpop.eup %1507  ;;  %v1022_v38 = vadd.f32 %v1506_v15, %v1021_v41  ;;  %1161 = vmatpush.msrb.mxu2 %v1123_v37  ;;  %v1009_v23 = vsel %vm1977_vm0, %v1937_v40, 0.0  ;;  %v1011_v1 = vadd.f32 %v1007_v31, %v1883_v61  ;;  %v1045_v25 = vor.u32 1.1754944e-38, %v1044_v62  ;;  %v1180_v41 = vld [vmem:[%s2047_s6 + $0x8] sm:$0xf] }
 0x39f   : > { %v1049_v4 = vmul.f32 %v1508_v17, %v1924_v21  ;;  %vm1054_vm15 = vweird.f32 %v1508_v17  ;;  %v1013_v35 = vadd.f32 %v1009_v23, %v1894_v59  ;;  %vm1073_vm14 = vcmp.eq.f32.partialorder %v1072_v22, 8.507059e+37  ;;  %1436 = vmatpush.msk.msrb.mxu3 %vm1142_vm8, %v1180_v41 }
 0x3a0   : > { %v1026_v36 = vsel %vm1025_vm5, %v1506_v15, %v1022_v38  ;;  %vm1055_vm1 = vmor %vm1053_vm6, %vm1054_vm15  ;;  %v1074_v15 = vand.u32 2147483648, %v1017_v42  ;;  %vm1068_vm5 = vweird.f32 %v1017_v42  ;;  %vm1129_vm15 = vcmask 97280  }
 0x3a1   : > { %v1031_v46 = vsel %vm1028_vm13, %v1030_v54, %v1026_v36  ;;  %v1050_v47 = vsub.f32 1.0, %v1049_v4  ;;  %1215 = vmatpush.msrb.mxu3 %v1179_v24  ;;  %vm1240_vm8 = vcmask 195584  }
 0x3a2   : > { %v1078_v48 = vmul.f32 %v1031_v46, %v1918_v53  ;;  %v1510_v11 = vpop.eup %1509  ;;  %v1012_v53 = vadd.f32 %v1008_v52, %v1868_v51  ;;  %v1042_v51 = vand.u32 2147483647, %v1933_v57  ;;  %v1075_v32 = vor.u32 1.1754944e-38, %v1074_v15 }
 0x3a3   : > { %v1051_v58 = vmul.f32 %v1508_v17, %v1050_v47  ;;  %v1034_v63 = vmul.f32 %v1510_v11, %v1933_v57  ;;  %v1512_v0 = vpop.eup %1511  ;;  %vm1039_vm12 = vweird.f32 %v1510_v11  ;;  %v1235_v57 = vld [vmem:[%s2049_s8 + $0x10] sm:$0xff]  ;;  %v1234_v47 = vld [vmem:[%s2049_s8 + $0x8] sm:$0xff] }
 0x3a4   : > { %1427 = vmatmul.msk.f32.vlgmr.msrb.gmra.mxu1 %vm553_vm2, %v1078_v48  ;;  %v1064_v18 = vmul.f32 %v1512_v0, %v1017_v42  ;;  %vm1069_vm4 = vweird.f32 %v1512_v0  ;;  %vm1040_vm11 = vmor %vm1038_vm3, %vm1039_vm12  ;;  %vm1043_vm7 = vcmp.eq.f32.partialorder %v1042_v51, 8.507059e+37  ;;  %1266 = vmatpush.msrb.mxu0 %v1235_v57 }
 0x3a5   : > { %v1052_v12 = vadd.f32 %v1508_v17, %v1051_v58  ;;  %v1035_v28 = vsub.f32 1.0, %v1034_v63  ;;  %vm1070_vm13 = vmor %vm1068_vm5, %vm1069_vm4 }
 0x3a6   : > { %v1065_v26 = vsub.f32 1.0, %v1064_v18  ;;  %1267 = vmatpush.msrb.mxu0 %v1234_v47 }
 0x3a7   : > { %v1056_v55 = vsel %vm1055_vm1, %v1508_v17, %v1052_v12  ;;  %v1036_v6 = vmul.f32 %v1510_v11, %v1035_v28  ;;  %v1478_v17 = vld [vmem:[%s2046_s5] ss:$0 sm:$0xff] }
 0x3a8   : > { %v1061_v16 = vsel %vm1058_vm9, %v1060_v13, %v1056_v55  ;;  %v1066_v14 = vmul.f32 %v1512_v0, %v1065_v26  ;;  %1268 = vmatpush.msrb.mxu0 %v1233_v8 }
 0x3a9   : > { %v1080_v20 = vmul.f32 %v1061_v16, %v1012_v53  ;;  %v1037_v7 = vadd.f32 %v1510_v11, %v1036_v6  ;;  %v1480_v53 = vld [vmem:[%s2050_s9] ss:$0 sm:$0xff] }
 0x3aa   : > { %v1067_v27 = vadd.f32 %v1512_v0, %v1066_v14 }
 0x3ab   : > { %v1041_v29 = vsel %vm1040_vm11, %v1510_v11, %v1037_v7 }
 0x3ac   : > { %v1046_v30 = vsel %vm1043_vm7, %v1045_v25, %v1041_v29  ;;  %v1071_v39 = vsel %vm1070_vm13, %v1512_v0, %v1067_v27 }
 0x3ad   : > { %v1079_v34 = vmul.f32 %v1046_v30, %v1011_v1  ;;  %v1076_v56 = vsel %vm1073_vm14, %v1075_v32, %v1071_v39 }
 0x3ae   : > { %v1081_v50 = vmul.f32 %v1076_v56, %v1013_v35 }
 0x3af   : > { %1428 = vmatmul.msk.f32.gmra.mxu1 %vm553_vm2, %v1079_v34 }
 0x3b7   : > { %1429 = vmatmul.msk.f32.gmra.mxu1 %vm553_vm2, %v1080_v20 }
 0x3bf   : > { %1430 = vmatmul.msk.f32.gmra.mxu1 %vm553_vm2, %v1081_v50 }
 0x421   : > { %v1111_v61 = vpop.f32.mrf.mxu1 }
 0x422   : > { %1432 = vmatmul.msk.f32.vlgmr.msrb.gmra.mxu2 %vm1129_vm15, %v1111_v61 }
 0x42c   : > { %v1114_v59 = vpop.f32.mrf.mxu1 }
 0x42d   : > { %1433 = vmatmul.msk.f32.gmra.mxu2 %vm1129_vm15, %v1114_v59 }
 0x434   : > { %v1117_v43 = vpop.f32.mrf.mxu1 }
 0x435   : > { %1434 = vmatmul.msk.f32.gmra.mxu2 %vm1129_vm15, %v1117_v43 }
 0x43c   : > { %v1120_v44 = vpop.f32.mrf.mxu1 }
 0x43d   : > { %1435 = vmatmul.msk.f32.gmra.mxu2 %vm1129_vm15, %v1120_v44 }
 0x4a5   : > { %v1163_v19 = vpop.f32.mrf.mxu2 }
 0x4a6   : > { %v1164_v49 = vadd.f32 %v1478_v17, %v1163_v19 }
 0x4a8   : > { %v1175_v38 = vmax.f32 %v1164_v49, 0.0 }
 0x4aa   : > { %1437 = vmatmul.msk.f32.vlgmr.msrb.gmra.mxu3 %vm1129_vm15, %v1175_v38 }
 0x4b0   : > { %v1166_v60 = vpop.f32.mrf.mxu2 }
 0x4b1   : > { %v1167_v54 = vadd.f32 %v1478_v17, %v1166_v60 }
 0x4b3   : > { %v1176_v4 = vmax.f32 %v1167_v54, 0.0 }
 0x4b5   : > { %1438 = vmatmul.msk.f32.gmra.mxu3 %vm1129_vm15, %v1176_v4 }
 0x4b8   : > { %v1169_v45 = vpop.f32.mrf.mxu2 }
 0x4b9   : > { %v1170_v40 = vadd.f32 %v1478_v17, %v1169_v45 }
 0x4bb   : > { %v1177_v36 = vmax.f32 %v1170_v40, 0.0 }
 0x4bd   : > { %1439 = vmatmul.msk.f32.gmra.mxu3 %vm1129_vm15, %v1177_v36 }
 0x4c0   : > { %v1172_v42 = vpop.f32.mrf.mxu2 }
 0x4c1   : > { %v1173_v46 = vadd.f32 %v1478_v17, %v1172_v42 }
 0x4c3   : > { %v1178_v48 = vmax.f32 %v1173_v46, 0.0 }
 0x4c5   : > { %1440 = vmatmul.msk.f32.gmra.mxu3 %vm1129_vm15, %v1178_v48 }
 0x52d   : > { %v1217_v58 = vpop.f32.mrf.mxu3 }
 0x52e   : > { %v1218_v3 = vadd.f32 %v1479_v33, %v1217_v58 }
 0x530   : > { %v1229_v9 = vmax.f32 %v1218_v3, 0.0 }
 0x532   : > { %1441 = vmatmul.msk.f32.vlgmr.msrb.gmra.mxu0 %vm1240_vm8, %v1229_v9 }
 0x538   : > { %v1220_v37 = vpop.f32.mrf.mxu3 }
 0x539   : > { %v1221_v52 = vadd.f32 %v1479_v33, %v1220_v37 }
 0x53b   : > { %v1230_v10 = vmax.f32 %v1221_v52, 0.0 }
 0x53d   : > { %1442 = vmatmul.msk.f32.gmra.mxu0 %vm1240_vm8, %v1230_v10 }
 0x540   : > { %v1223_v11 = vpop.f32.mrf.mxu3 }
 0x541   : > { %v1224_v12 = vadd.f32 %v1479_v33, %v1223_v11 }
 0x543   : > { %v1231_v63 = vmax.f32 %v1224_v12, 0.0 }
 0x545   : > { %1443 = vmatmul.msk.f32.gmra.mxu0 %vm1240_vm8, %v1231_v63 }
 0x548   : > { %v1226_v13 = vpop.f32.mrf.mxu3 }
 0x549   : > { %v1227_v0 = vadd.f32 %v1479_v33, %v1226_v13 }
 0x54b   : > { %v1232_v2 = vmax.f32 %v1227_v0, 0.0 }
 0x54d   : > { %1444 = vmatmul.msk.f32.gmra.mxu0 %vm1240_vm8, %v1232_v2 }
 0x5af   : > { %v1270_v55 = vpop.f32.mrf.mxu0 }
 0x5b0   : > { %v1271_v5 = vadd.f32 %v1480_v53, %v1270_v55 }
 0x5b2   : > { %v1282_v28 = vmax.f32 %v1271_v5, 0.0 }
 0x5b4   : > { %1286 = vst.msk [vmem:[%s448_s24] sm:$0xff] %vm553_vm2, %v1282_v28 }
 0x5ba   : > { %v1273_v16 = vpop.f32.mrf.mxu0 }
 0x5bb   : > { %v1274_v18 = vadd.f32 %v1480_v53, %v1273_v16 }
 0x5bd   : > { %v1283_v31 = vmax.f32 %v1274_v18, 0.0 }
 0x5bf   : > { %1287 = vst.msk [vmem:[%s448_s24 + $0x8] sm:$0xff] %vm553_vm2, %v1283_v31 }
 0x5c2   : > { %v1276_v62 = vpop.f32.mrf.mxu0 }
 0x5c3   : > { %v1277_v20 = vadd.f32 %v1480_v53, %v1276_v62 }
 0x5c5   : > { %v1284_v6 = vmax.f32 %v1277_v20, 0.0 }
 0x5c7   : > { %1288 = vst.msk [vmem:[%s448_s24 + $0x10] sm:$0xff] %vm553_vm2, %v1284_v6 }
 0x5ca   : > { %v1279_v51 = vpop.f32.mrf.mxu0 }
 0x5cb   : > { %v1280_v26 = vadd.f32 %v1480_v53, %v1279_v51 }
 0x5cd   : > { %v1285_v21 = vmax.f32 %v1280_v26, 0.0 }
 0x5cf   : > { %1289 = vst.msk [vmem:[%s448_s24 + $0x18] sm:$0xff] %vm553_vm2, %v1285_v21 }
 0x5d0 PF: > { %s20_s15 = sadd.s32 1, %s1535_s15   ;;  %s2076_s13 = smov %s1531_s14 }
 0x5d1   : > { %p17_p5 = scmp.ge.s32.totalorder %s20_s15, 4   ;;  %s2077_s14 = smov %s2079_s16 }
 0x5d3   :  { %19 = sbr.rel (!%p17_p5) target bundleno = 2 (0x2), region = 99 }

</bundles_post_ra>
